<compile_context>
chip_gen: v7x
topology: tpu7x:2x2x1
jax: 0.10.0
libtpu: 0.0.40
codegen_flags: <defaults>
</compile_context>

<pallas_src>
import jax
import jax.numpy as jnp
from jax.experimental import pallas as pl
from jax.experimental.pallas import tpu as pltpu


def _self_attention_kernel(x_ref, wq_ref, wk_ref, wv_ref, wu_ref, b_ref, o_ref):
    """One batch tile per grid step; all heads and all TB*T rows fused.

    x_ref  : (H, TB*T, K)  input rows, replicated per head (wrapper-side)
    wq_ref : (H, K, K)     per-head W_q (out, in), pre-scaled by 1/sqrt(K) (resident)
    wk_ref : (H, K, K)     per-head W_k (out, in)                          (resident)
    wv_ref : (H, K, K)     per-head W_v (out, in)                          (resident)
    wu_ref : (H, K, K)     per-head slab of unifyheads.weight (out, in)    (resident)
    b_ref  : (1, K)        unifyheads bias                                 (resident)
    o_ref  : (TB, T, K)    output tile
    """
    H, M, K = x_ref.shape
    TB, T, _ = o_ref.shape
    G = H * TB

    x = x_ref[...]  # (H, M, K)

    # Head-batched QKV projection: leading-batch-dim dot_general, contraction on
    # the last axes, M = TB*T rows per head.  1/sqrt(K) is folded into wq_ref.
    q = jnp.einsum('hmk,hok->hmo', x, wq_ref[...], preferred_element_type=jnp.float32)
    k = jnp.einsum('hmk,hok->hmo', x, wk_ref[...], preferred_element_type=jnp.float32)
    v = jnp.einsum('hmk,hok->hmo', x, wv_ref[...], preferred_element_type=jnp.float32)

    # Rows are (b, t); regroup to batch dim g = (h, b) so attention never mixes
    # batch elements.  Minor dim K unchanged and T is a sublane multiple, so these
    # are pure major-dim reshapes (no relayout, no transpose).
    q = q.reshape(G, T, K)
    k = k.reshape(G, T, K)
    v = v.reshape(G, T, K)

    # Scores + softmax over keys, batched over all (head, batch) pairs at once.
    s = jnp.einsum('gqd,gkd->gqk', q, k, preferred_element_type=jnp.float32)  # (G, T, T)
    s = s - jnp.max(s, axis=-1, keepdims=True)
    p = jnp.exp(s)
    # approx=True would put the divide on the EUP for free; kept exact so the
    # strict 1e-4 check against the f32 reference holds.
    p = p * pl.reciprocal(jnp.sum(p, axis=-1, keepdims=True), approx=False)

    attn = jnp.einsum('gqk,gkd->gqd', p, v, preferred_element_type=jnp.float32)  # (G, T, K)

    # Unify heads: per-head (K,K) matmul, then sum over heads (== concatenating the
    # heads on the feature axis and one (H*K, K) matmul, without the in-kernel concat).
    attn = attn.reshape(H, M, K)
    yh = jnp.einsum('hmk,hok->hmo', attn, wu_ref[...],
                    preferred_element_type=jnp.float32)  # (H, M, K)
    # Head sum as a static add chain over the leading dim: H-1 vector adds, no
    # lane slices / relayouts (equivalent to jnp.sum(yh, axis=0)).
    y = yh[0]
    for h in range(1, H):
        y = y + yh[h]
    y = y + b_ref[...]  # (M, K) + (1, K)

    o_ref[...] = y.reshape(TB, T, K).astype(o_ref.dtype)


def _pick_batch_tile(batch, seq, target_rows=256):
    """Smallest divisor TB of `batch` with TB*seq >= target_rows, else the whole batch."""
    for d in range(1, batch + 1):
        if batch % d == 0 and d * seq >= target_rows:
            return d
    return batch


def self_attention(x, wq, wk, wv, wu, bu, *, heads):
    """x: (B, T, K). wq/wk/wv: (heads*K, K). wu: (K, heads*K). bu: (K,)."""
    B, T, K = x.shape
    H = heads
    scale = 1.0 / (K ** 0.5)

    # One-time weight transforms (wrapper-side): per-head (out, in) slabs;
    # the score scale is folded into Wq (weight transform, not activation scaling).
    wq_h = wq.reshape(H, K, K) * scale                      # (H, K, K)
    wk_h = wk.reshape(H, K, K)                              # (H, K, K)
    wv_h = wv.reshape(H, K, K)                              # (H, K, K)
    wu_h = jnp.transpose(wu.reshape(K, H, K), (1, 0, 2))    # (H, K_out, K_in)
    bu2 = bu.reshape(1, K)

    # Replicate x per head so every in-kernel matmul is a leading-batch-dim
    # dot_general with zero in-kernel relayout.  Costs H * B*T*K*4 bytes (tiny).
    x_rep = jnp.broadcast_to(x.reshape(1, B * T, K), (H, B * T, K))

    TB = _pick_batch_tile(B, T)     # B=2, T=8 -> TB=2 -> a single grid step
    n_steps = B // TB
    M = TB * T

    return pl.pallas_call(
        _self_attention_kernel,
        out_shape=jax.ShapeDtypeStruct((B, T, K), x.dtype),
        grid_spec=pltpu.PrefetchScalarGridSpec(
            num_scalar_prefetch=0,
            grid=(n_steps,),
            in_specs=[
                pl.BlockSpec((H, M, K), lambda i: (0, i, 0)),   # x (replicated per head)
                pl.BlockSpec((H, K, K), lambda i: (0, 0, 0)),   # Wq (resident)
                pl.BlockSpec((H, K, K), lambda i: (0, 0, 0)),   # Wk (resident)
                pl.BlockSpec((H, K, K), lambda i: (0, 0, 0)),   # Wv (resident)
                pl.BlockSpec((H, K, K), lambda i: (0, 0, 0)),   # Wu (resident)
                pl.BlockSpec((1, K), lambda i: (0, 0)),         # bias (resident)
            ],
            out_specs=pl.BlockSpec((TB, T, K), lambda i: (i, 0, 0)),
        ),
        compiler_params=pltpu.CompilerParams(
            dimension_semantics=("parallel",)),
    )(x_rep, wq_h, wk_h, wv_h, wu_h, bu2)


def self_attention_ref(x, wq, wk, wv, wu, bu, *, heads):
    """Pure-JAX reference mirroring the PyTorch forward exactly."""
    b, t, k = x.shape
    h = heads
    q = (x @ wq.T).reshape(b, t, h, k)
    ks = (x @ wk.T).reshape(b, t, h, k)
    v = (x @ wv.T).reshape(b, t, h, k)
    q = jnp.transpose(q, (0, 2, 1, 3)).reshape(b * h, t, k) / (k ** 0.25)
    ks = jnp.transpose(ks, (0, 2, 1, 3)).reshape(b * h, t, k) / (k ** 0.25)
    v = jnp.transpose(v, (0, 2, 1, 3)).reshape(b * h, t, k)
    dot = jnp.einsum("btk,bsk->bts", q, ks)
    dot = jax.nn.softmax(dot, axis=2)
    out = jnp.einsum("bts,bsk->btk", dot, v).reshape(b, h, t, k)
    out = jnp.transpose(out, (0, 2, 1, 3)).reshape(b, t, h * k)
    return out @ wu.T + bu


if __name__ == "__main__":
    B, T, K, HEADS = 2, 8, 32, 8

    key = jax.random.PRNGKey(0)
    kx, kq, kk, kv, ku, kb = jax.random.split(key, 6)

    x = jax.random.normal(kx, (B, T, K), dtype=jnp.float32)
    # nn.Linear weights: (out_features, in_features)
    wq = jax.random.normal(kq, (HEADS * K, K), dtype=jnp.float32) * 0.05
    wk = jax.random.normal(kk, (HEADS * K, K), dtype=jnp.float32) * 0.05
    wv = jax.random.normal(kv, (HEADS * K, K), dtype=jnp.float32) * 0.05
    wu = jax.random.normal(ku, (K, HEADS * K), dtype=jnp.float32) * 0.05
    bu = jax.random.normal(kb, (K,), dtype=jnp.float32) * 0.05

    out = self_attention(x, wq, wk, wv, wu, bu, heads=HEADS)
    out = jax.block_until_ready(out)

    ref = self_attention_ref(x, wq, wk, wv, wu, bu, heads=HEADS)
    assert out.shape == (B, T, K)
    assert jnp.allclose(out, ref, atol=1e-4, rtol=1e-4), (
        f"max abs diff {jnp.max(jnp.abs(out - ref))}")

    print("KERNEL_OK")
</pallas_src>

<mosaic_0001>
module attributes {stable_mosaic.version = 11 : i64} {
  func.func @_self_attention_kernel(%arg0: i32, %arg1: memref<8x16x32xf32, #tpu.memory_space<vmem>>, %arg2: memref<8x32x32xf32, #tpu.memory_space<vmem>>, %arg3: memref<8x32x32xf32, #tpu.memory_space<vmem>>, %arg4: memref<8x32x32xf32, #tpu.memory_space<vmem>>, %arg5: memref<8x32x32xf32, #tpu.memory_space<vmem>>, %arg6: memref<1x32xf32, #tpu.memory_space<vmem>>, %arg7: memref<2x8x32xf32, #tpu.memory_space<vmem>>) attributes {dimension_semantics = [#tpu.dimension_semantics<parallel>], iteration_bounds = array<i64: 1>, scalar_prefetch = 0 : i64, scratch_operands = 0 : i64, tpu.core_type = #tpu.core_type<tc>, window_params = [{transform_indices = @transform_0, window_bounds = array<i64: 8, 16, 32>}, {pipeline_mode = #tpu.pipeline_mode<synchronous>, transform_indices = @transform_1, window_bounds = array<i64: 8, 32, 32>}, {pipeline_mode = #tpu.pipeline_mode<synchronous>, transform_indices = @transform_2, window_bounds = array<i64: 8, 32, 32>}, {pipeline_mode = #tpu.pipeline_mode<synchronous>, transform_indices = @transform_3, window_bounds = array<i64: 8, 32, 32>}, {pipeline_mode = #tpu.pipeline_mode<synchronous>, transform_indices = @transform_4, window_bounds = array<i64: 8, 32, 32>}, {pipeline_mode = #tpu.pipeline_mode<synchronous>, transform_indices = @transform_5, window_bounds = array<i64: 1, 32>}, {transform_indices = @transform_6, window_bounds = array<i64: 2, 8, 32>}]} {
    %c0 = arith.constant 0 : index
    %c0_0 = arith.constant 0 : index
    %c0_1 = arith.constant 0 : index
    %0 = vector.load %arg1[%c0, %c0_0, %c0_1] : memref<8x16x32xf32, #tpu.memory_space<vmem>>, vector<8x16x32xf32>
    %c0_2 = arith.constant 0 : index
    %c0_3 = arith.constant 0 : index
    %c0_4 = arith.constant 0 : index
    %1 = vector.load %arg2[%c0_2, %c0_3, %c0_4] : memref<8x32x32xf32, #tpu.memory_space<vmem>>, vector<8x32x32xf32>
    "tpu.trace_start"() <{level = 10 : i32, message = "hmk,hok->hmo"}> : () -> ()
    %cst = arith.constant dense<0.000000e+00> : vector<8x16x32xf32>
    %2 = tpu.matmul %0, %1, %cst {dimension_numbers = #tpu.dot_dimension_numbers<[2], [2], [1], [1], [0, 0, 0, 1, 1, 1], [0], [0]>} : vector<8x16x32xf32>, vector<8x32x32xf32>, vector<8x16x32xf32> -> vector<8x16x32xf32>
    "tpu.trace_stop"() : () -> ()
    %c0_5 = arith.constant 0 : index
    %c0_6 = arith.constant 0 : index
    %c0_7 = arith.constant 0 : index
    %3 = vector.load %arg3[%c0_5, %c0_6, %c0_7] : memref<8x32x32xf32, #tpu.memory_space<vmem>>, vector<8x32x32xf32>
    "tpu.trace_start"() <{level = 10 : i32, message = "hmk,hok->hmo"}> : () -> ()
    %cst_8 = arith.constant dense<0.000000e+00> : vector<8x16x32xf32>
    %4 = tpu.matmul %0, %3, %cst_8 {dimension_numbers = #tpu.dot_dimension_numbers<[2], [2], [1], [1], [0, 0, 0, 1, 1, 1], [0], [0]>} : vector<8x16x32xf32>, vector<8x32x32xf32>, vector<8x16x32xf32> -> vector<8x16x32xf32>
    "tpu.trace_stop"() : () -> ()
    %c0_9 = arith.constant 0 : index
    %c0_10 = arith.constant 0 : index
    %c0_11 = arith.constant 0 : index
    %5 = vector.load %arg4[%c0_9, %c0_10, %c0_11] : memref<8x32x32xf32, #tpu.memory_space<vmem>>, vector<8x32x32xf32>
    "tpu.trace_start"() <{level = 10 : i32, message = "hmk,hok->hmo"}> : () -> ()
    %cst_12 = arith.constant dense<0.000000e+00> : vector<8x16x32xf32>
    %6 = tpu.matmul %0, %5, %cst_12 {dimension_numbers = #tpu.dot_dimension_numbers<[2], [2], [1], [1], [0, 0, 0, 1, 1, 1], [0], [0]>} : vector<8x16x32xf32>, vector<8x32x32xf32>, vector<8x16x32xf32> -> vector<8x16x32xf32>
    "tpu.trace_stop"() : () -> ()
    %7 = vector.shape_cast %2 : vector<8x16x32xf32> to vector<16x8x32xf32>
    %8 = vector.shape_cast %4 : vector<8x16x32xf32> to vector<16x8x32xf32>
    %9 = vector.shape_cast %6 : vector<8x16x32xf32> to vector<16x8x32xf32>
    "tpu.trace_start"() <{level = 10 : i32, message = "gqd,gkd->gqk"}> : () -> ()
    %cst_13 = arith.constant dense<0.000000e+00> : vector<16x8x8xf32>
    %10 = tpu.matmul %7, %8, %cst_13 {dimension_numbers = #tpu.dot_dimension_numbers<[2], [2], [1], [1], [0, 0, 0, 1, 1, 1], [0], [0]>} : vector<16x8x32xf32>, vector<16x8x32xf32>, vector<16x8x8xf32> -> vector<16x8x8xf32>
    "tpu.trace_stop"() : () -> ()
    %cst_14 = arith.constant dense<0xFF800000> : vector<16x8xf32>
    %11 = vector.multi_reduction <maximumf>, %10, %cst_14 [2] : vector<16x8x8xf32> to vector<16x8xf32>
    %12 = vector.shape_cast %11 : vector<16x8xf32> to vector<16x8x1xf32>
    %13 = vector.broadcast %12 : vector<16x8x1xf32> to vector<16x8x8xf32>
    %14 = arith.subf %10, %13 : vector<16x8x8xf32>
    %15 = math.exp %14 : vector<16x8x8xf32>
    %cst_15 = arith.constant dense<0.000000e+00> : vector<16x8xf32>
    %16 = vector.multi_reduction <add>, %15, %cst_15 [2] : vector<16x8x8xf32> to vector<16x8xf32>
    %17 = vector.shape_cast %16 : vector<16x8xf32> to vector<16x8x1xf32>
    %18 = tpu.reciprocal %17 : vector<16x8x1xf32> -> vector<16x8x1xf32>
    %19 = vector.broadcast %18 : vector<16x8x1xf32> to vector<16x8x8xf32>
    %20 = arith.mulf %15, %19 : vector<16x8x8xf32>
    "tpu.trace_start"() <{level = 10 : i32, message = "gqk,gkd->gqd"}> : () -> ()
    %cst_16 = arith.constant dense<0.000000e+00> : vector<16x8x32xf32>
    %21 = tpu.matmul %20, %9, %cst_16 {dimension_numbers = #tpu.dot_dimension_numbers<[2], [1], [1], [2], [0, 0, 0, 1, 1, 2], [0], [0]>} : vector<16x8x8xf32>, vector<16x8x32xf32>, vector<16x8x32xf32> -> vector<16x8x32xf32>
    "tpu.trace_stop"() : () -> ()
    %22 = vector.shape_cast %21 : vector<16x8x32xf32> to vector<8x16x32xf32>
    %c0_17 = arith.constant 0 : index
    %c0_18 = arith.constant 0 : index
    %c0_19 = arith.constant 0 : index
    %23 = vector.load %arg5[%c0_17, %c0_18, %c0_19] : memref<8x32x32xf32, #tpu.memory_space<vmem>>, vector<8x32x32xf32>
    "tpu.trace_start"() <{level = 10 : i32, message = "hmk,hok->hmo"}> : () -> ()
    %cst_20 = arith.constant dense<0.000000e+00> : vector<8x16x32xf32>
    %24 = tpu.matmul %22, %23, %cst_20 {dimension_numbers = #tpu.dot_dimension_numbers<[2], [2], [1], [1], [0, 0, 0, 1, 1, 1], [0], [0]>} : vector<8x16x32xf32>, vector<8x32x32xf32>, vector<8x16x32xf32> -> vector<8x16x32xf32>
    "tpu.trace_stop"() : () -> ()
    %25 = vector.extract_strided_slice %24 {offsets = [0, 0, 0], sizes = [1, 16, 32], strides = [1, 1, 1]} : vector<8x16x32xf32> to vector<1x16x32xf32>
    %26 = vector.shape_cast %25 : vector<1x16x32xf32> to vector<16x32xf32>
    %27 = vector.extract_strided_slice %24 {offsets = [1, 0, 0], sizes = [1, 16, 32], strides = [1, 1, 1]} : vector<8x16x32xf32> to vector<1x16x32xf32>
    %28 = vector.shape_cast %27 : vector<1x16x32xf32> to vector<16x32xf32>
    %29 = arith.addf %26, %28 : vector<16x32xf32>
    %30 = vector.extract_strided_slice %24 {offsets = [2, 0, 0], sizes = [1, 16, 32], strides = [1, 1, 1]} : vector<8x16x32xf32> to vector<1x16x32xf32>
    %31 = vector.shape_cast %30 : vector<1x16x32xf32> to vector<16x32xf32>
    %32 = arith.addf %29, %31 : vector<16x32xf32>
    %33 = vector.extract_strided_slice %24 {offsets = [3, 0, 0], sizes = [1, 16, 32], strides = [1, 1, 1]} : vector<8x16x32xf32> to vector<1x16x32xf32>
    %34 = vector.shape_cast %33 : vector<1x16x32xf32> to vector<16x32xf32>
    %35 = arith.addf %32, %34 : vector<16x32xf32>
    %36 = vector.extract_strided_slice %24 {offsets = [4, 0, 0], sizes = [1, 16, 32], strides = [1, 1, 1]} : vector<8x16x32xf32> to vector<1x16x32xf32>
    %37 = vector.shape_cast %36 : vector<1x16x32xf32> to vector<16x32xf32>
    %38 = arith.addf %35, %37 : vector<16x32xf32>
    %39 = vector.extract_strided_slice %24 {offsets = [5, 0, 0], sizes = [1, 16, 32], strides = [1, 1, 1]} : vector<8x16x32xf32> to vector<1x16x32xf32>
    %40 = vector.shape_cast %39 : vector<1x16x32xf32> to vector<16x32xf32>
    %41 = arith.addf %38, %40 : vector<16x32xf32>
    %42 = vector.extract_strided_slice %24 {offsets = [6, 0, 0], sizes = [1, 16, 32], strides = [1, 1, 1]} : vector<8x16x32xf32> to vector<1x16x32xf32>
    %43 = vector.shape_cast %42 : vector<1x16x32xf32> to vector<16x32xf32>
    %44 = arith.addf %41, %43 : vector<16x32xf32>
    %45 = vector.extract_strided_slice %24 {offsets = [7, 0, 0], sizes = [1, 16, 32], strides = [1, 1, 1]} : vector<8x16x32xf32> to vector<1x16x32xf32>
    %46 = vector.shape_cast %45 : vector<1x16x32xf32> to vector<16x32xf32>
    %47 = arith.addf %44, %46 : vector<16x32xf32>
    %c0_21 = arith.constant 0 : index
    %c0_22 = arith.constant 0 : index
    %48 = vector.load %arg6[%c0_21, %c0_22] : memref<1x32xf32, #tpu.memory_space<vmem>>, vector<1x32xf32>
    %49 = vector.broadcast %48 : vector<1x32xf32> to vector<16x32xf32>
    %50 = arith.addf %47, %49 : vector<16x32xf32>
    %51 = vector.shape_cast %50 : vector<16x32xf32> to vector<2x8x32xf32>
    %c0_23 = arith.constant 0 : index
    %c0_24 = arith.constant 0 : index
    %c0_25 = arith.constant 0 : index
    %52 = vector.load %arg7[%c0_23, %c0_24, %c0_25] : memref<2x8x32xf32, #tpu.memory_space<vmem>>, vector<2x8x32xf32>
    tpu.vector_store %arg7[%c0_23, %c0_24, %c0_25], %51 {strides = array<i32>} : memref<2x8x32xf32, #tpu.memory_space<vmem>>, vector<2x8x32xf32>,
    return
  }
  func.func @transform_0(%arg0: i32) -> (i32, i32, i32) {
    %c0_i32 = arith.constant 0 : i32
    %c0_i32_0 = arith.constant 0 : i32
    %c0_i32_1 = arith.constant 0 : i32
    return %c0_i32, %arg0, %c0_i32_0 : i32, i32, i32
  }
  func.func @transform_1(%arg0: i32) -> (i32, i32, i32) {
    %c0_i32 = arith.constant 0 : i32
    %c0_i32_0 = arith.constant 0 : i32
    %c0_i32_1 = arith.constant 0 : i32
    %c0_i32_2 = arith.constant 0 : i32
    return %c0_i32, %c0_i32_0, %c0_i32_1 : i32, i32, i32
  }
  func.func @transform_2(%arg0: i32) -> (i32, i32, i32) {
    %c0_i32 = arith.constant 0 : i32
    %c0_i32_0 = arith.constant 0 : i32
    %c0_i32_1 = arith.constant 0 : i32
    %c0_i32_2 = arith.constant 0 : i32
    return %c0_i32, %c0_i32_0, %c0_i32_1 : i32, i32, i32
  }
  func.func @transform_3(%arg0: i32) -> (i32, i32, i32) {
    %c0_i32 = arith.constant 0 : i32
    %c0_i32_0 = arith.constant 0 : i32
    %c0_i32_1 = arith.constant 0 : i32
    %c0_i32_2 = arith.constant 0 : i32
    return %c0_i32, %c0_i32_0, %c0_i32_1 : i32, i32, i32
  }
  func.func @transform_4(%arg0: i32) -> (i32, i32, i32) {
    %c0_i32 = arith.constant 0 : i32
    %c0_i32_0 = arith.constant 0 : i32
    %c0_i32_1 = arith.constant 0 : i32
    %c0_i32_2 = arith.constant 0 : i32
    return %c0_i32, %c0_i32_0, %c0_i32_1 : i32, i32, i32
  }
  func.func @transform_5(%arg0: i32) -> (i32, i32) {
    %c0_i32 = arith.constant 0 : i32
    %c0_i32_0 = arith.constant 0 : i32
    %c0_i32_1 = arith.constant 0 : i32
    return %c0_i32, %c0_i32_0 : i32, i32
  }
  func.func @transform_6(%arg0: i32) -> (i32, i32, i32) {
    %c0_i32 = arith.constant 0 : i32
    %c0_i32_0 = arith.constant 0 : i32
    %c0_i32_1 = arith.constant 0 : i32
    return %arg0, %c0_i32, %c0_i32_0 : i32, i32, i32
  }
}

</mosaic_0001>

<bundles_post_ra>
// kernel: tpu_custom_call.1
= control target key start
LH: loop header
LB: loop body
LE: loop exit
PB: predicated region body
PF: predicated region fallthrough
CT: control target
= control target key end

     0   :  { %11 = vsyncpa [#allocation3], 0  ;;  %s8253_s0 = inlined_call_operand.hbm [shape: f32[8,16,32], index: 0, kind: input, shape index: {}]   ;;  %s8254_s1 = inlined_call_operand.hbm [shape: f32[8,32,32], index: 1, kind: input, shape index: {}]   ;;  %s8255_s2 = inlined_call_operand.hbm [shape: f32[8,32,32], index: 2, kind: input, shape index: {}]   ;;  %s8256_s3 = inlined_call_operand.hbm [shape: f32[8,32,32], index: 3, kind: input, shape index: {}]   ;;  %s8257_s4 = inlined_call_operand.hbm [shape: f32[8,32,32], index: 4, kind: input, shape index: {}]   ;;  %s8258_s5 = inlined_call_operand.vmem [shape: f32[1,32], index: 5, kind: input, shape index: {}]   ;;  %s8259_s6 = inlined_call_operand.hbm [shape: f32[2,8,32], index: 6, kind: output, shape index: {}]  }
   0x1   :  { %12 = vsyncpa [#allocation6], 0 }
   0x2   :  { %13 = vsyncpa [#allocation9], 0 }
   0x3   :  { %14 = vsyncpa [#allocation4], 0  ;;  %s7343_s21 = smov [#allocation5]   ;;  %s7344_s23 = smov [#allocation8]  }
   0x4   :  { %s32_s22 = sshll.u32 %s7343_s21, 4  ;;  %s56_s24 = sshll.u32 %s7344_s23, 4  ;;  %s33_s22 = int_to_ptr.vmem [resolvable:$true] %s32_s22  ;;  %s7388_s24 = int_to_ptr.vmem [resolvable:$true] %s56_s24 }
   0x5   :  { %s7203_s27 = scalar_lea.hbm %s8254_s1, 4096 }
   0x6   :  { %p7204_p0 = scmp.ne.s32.totalorder %s8254_s1, %s7203_s27  ;;  %p7207_p1 = scmp.lt.u32.totalorder %s7203_s27, %s8254_s1 }
   0x8   :  { %p7209_p2 = pnand %p7207_p1, %p7204_p0 }
   0xa   :  { %7212 = shalt.err (!%p7209_p2)
}
   0xb   :  { %s7213_s8 = scalar_lea.vmem %s33_s22, 4096  ;;  %p7218_p4 = scmp.lt.s32.totalorder %s33_s22, %s33_s22 }
   0xc   :  { %p7214_p3 = scmp.ne.s32.totalorder %s33_s22, %s7213_s8  ;;  %p7219_p5 = scmp.lt.s32.totalorder %s7213_s8, %s7213_s8 }
   0xe   :  { %p7220_p6 = por %p7219_p5, %p7218_p4 }
  0x10   :  { %p7221_p7 = pnand %p7220_p6, %p7214_p3 }
  0x12   :  { %7224 = shalt.err (!%p7221_p7)
}
  0x13   :  { %s7345_s9 = smov 128   ;;  %s7346_s10 = smov 8  }
  0x14   :  { %38 = dma.hbm_to_vmem [thread:$0]  %s8254_s1, 4096, %s33_s22, [#allocation6], %s7345_s9, %s7345_s9, %s7346_s10  }
  0x15   :  { %s7225_s15 = scalar_lea.hbm %s8256_s3, 4096 }
  0x16   :  { %p7226_p8 = scmp.ne.s32.totalorder %s8256_s3, %s7225_s15  ;;  %p7229_p9 = scmp.lt.u32.totalorder %s7225_s15, %s8256_s3 }
  0x18   :  { %p7231_p10 = pnand %p7229_p9, %p7226_p8 }
  0x1a   :  { %7234 = shalt.err (!%p7231_p10)
}
  0x1b   :  { %s7235_s20 = scalar_lea.vmem %s7388_s24, 4096  ;;  %p7240_p12 = scmp.lt.s32.totalorder %s7388_s24, %s7388_s24 }
  0x1c   :  { %p7236_p11 = scmp.ne.s32.totalorder %s7388_s24, %s7235_s20  ;;  %p7241_p13 = scmp.lt.s32.totalorder %s7235_s20, %s7235_s20 }
  0x1e   :  { %p7242_p0 = por %p7241_p13, %p7240_p12 }
  0x20   :  { %p7243_p1 = pnand %p7242_p0, %p7236_p11 }
  0x22   :  { %7246 = shalt.err (!%p7243_p1)
}
  0x23   :  { %62 = dma.hbm_to_vmem [thread:$0]  %s8256_s3, 4096, %s7388_s24, [#allocation9], %s7345_s9, %s7345_s9, %s7346_s10  }
  0x24   :  { %s7347_s22 = smov [#allocation2]   ;;  %s7348_s25 = smov [#allocation7]  }
  0x25   :  { %s20_s23 = sshll.u32 %s7347_s22, 4  ;;  %s44_s26 = sshll.u32 %s7348_s25, 4  ;;  %s21_s23 = int_to_ptr.vmem [resolvable:$true] %s20_s23  ;;  %s7425_s26 = int_to_ptr.vmem [resolvable:$true] %s44_s26 }
  0x26   :  { %s7247_s29 = scalar_lea.hbm %s8253_s0, 2048 }
  0x27   :  { %p7248_p2 = scmp.ne.s32.totalorder %s8253_s0, %s7247_s29  ;;  %p7251_p3 = scmp.lt.u32.totalorder %s7247_s29, %s8253_s0 }
  0x29   :  { %p7253_p4 = pnand %p7251_p3, %p7248_p2 }
  0x2b   :  { %7256 = shalt.err (!%p7253_p4)
}
  0x2c   :  { %s7257_s3 = scalar_lea.vmem %s21_s23, 2048  ;;  %p7262_p6 = scmp.lt.s32.totalorder %s21_s23, %s21_s23 }
  0x2d   :  { %p7258_p5 = scmp.ne.s32.totalorder %s21_s23, %s7257_s3  ;;  %p7263_p7 = scmp.lt.s32.totalorder %s7257_s3, %s7257_s3 }
  0x2f   :  { %p7264_p8 = por %p7263_p7, %p7262_p6 }
  0x31   :  { %p7265_p9 = pnand %p7264_p8, %p7258_p5 }
  0x33   :  { %7268 = shalt.err (!%p7265_p9)
}
  0x34   :  { %26 = dma.hbm_to_vmem [thread:$0]  %s8253_s0, 2048, %s21_s23, [#allocation3], %s7345_s9, %s7345_s9, %s7346_s10  }
  0x35   :  { %s7269_s15 = scalar_lea.hbm %s8255_s2, 4096 }
  0x36   :  { %p7270_p10 = scmp.ne.s32.totalorder %s8255_s2, %s7269_s15  ;;  %p7273_p11 = scmp.lt.u32.totalorder %s7269_s15, %s8255_s2 }
  0x38   :  { %p7275_p12 = pnand %p7273_p11, %p7270_p10 }
  0x3a   :  { %7278 = shalt.err (!%p7275_p12)
}
  0x3b   :  { %s7279_s20 = scalar_lea.vmem %s7425_s26, 4096  ;;  %p7284_p0 = scmp.lt.s32.totalorder %s7425_s26, %s7425_s26 }
  0x3c   :  { %p7280_p13 = scmp.ne.s32.totalorder %s7425_s26, %s7279_s20  ;;  %p7285_p1 = scmp.lt.s32.totalorder %s7279_s20, %s7279_s20 }
  0x3e   :  { %p7286_p2 = por %p7285_p1, %p7284_p0 }
  0x40   :  { %p7287_p3 = pnand %p7286_p2, %p7280_p13 }
  0x42   :  { %7290 = shalt.err (!%p7287_p3)
}
  0x43   :  { %50 = dma.hbm_to_vmem [thread:$0]  %s8255_s2, 4096, %s7425_s26, [#allocation6], %s7345_s9, %s7345_s9, %s7346_s10  }
  0x44   :  { %s7349_s21 = smov [#allocation10]   ;;  %s7291_s27 = scalar_lea.hbm %s8257_s4, 4096 }
  0x45   :  { %s68_s22 = sshll.u32 %s7349_s21, 4  ;;  %p7292_p4 = scmp.ne.s32.totalorder %s8257_s4, %s7291_s27  ;;  %s69_s22 = int_to_ptr.vmem [resolvable:$true] %s68_s22 }
  0x46   :  { %p7295_p5 = scmp.lt.u32.totalorder %s7291_s27, %s8257_s4 }
  0x48   :  { %p7297_p6 = pnand %p7295_p5, %p7292_p4 }
  0x4a   :  { %7300 = shalt.err (!%p7297_p6)
}
  0x4b   :  { %s7301_s8 = scalar_lea.vmem %s69_s22, 4096  ;;  %p7306_p8 = scmp.lt.s32.totalorder %s69_s22, %s69_s22 }
  0x4c   :  { %p7302_p7 = scmp.ne.s32.totalorder %s69_s22, %s7301_s8  ;;  %p7307_p9 = scmp.lt.s32.totalorder %s7301_s8, %s7301_s8 }
  0x4e   :  { %p7308_p10 = por %p7307_p9, %p7306_p8 }
  0x50   :  { %p7309_p11 = pnand %p7308_p10, %p7302_p7 }
  0x52   :  { %7312 = shalt.err (!%p7309_p11)
}
  0x53   :  { %74 = dma.hbm_to_vmem [thread:$0]  %s8257_s4, 4096, %s69_s22, [#allocation9], %s7345_s9, %s7345_s9, %s7346_s10  }
  0x54   :  { %7335 = dma.done.wait [#allocation3], 2048  }
  0x55   :  { %7336 = vsyncadd [#allocation3], 4294965248 }
  0x56   :  { %7337 = dma.done.wait [#allocation6], 8192  }
  0x57   :  { %7338 = vsyncadd [#allocation6], 4294959104 }
  0x58   :  { %7339 = dma.done.wait [#allocation9], 8192  }
  0x59   :  { %7340 = vsyncadd [#allocation9], 4294959104  ;;  %vm140_vm0 = vcmask 261120   ;;  %v108_v1 = vld [vmem:[#allocation5] sm:$0xff]  ;;  %v109_v2 = vld [vmem:[#allocation5 + $0x8] sm:$0xff]  ;;  %vm7351_vm2 = vmmov 0  }
  0x5a   :  { %vm7479_vm1 = vmpackc.low %vm140_vm0, %vm140_vm0  ;;  %v885_v3 = vld [vmem:[#allocation7] sm:$0xff]  ;;  %v6731_v4 = vpack.c.bf16 %v109_v2, %v108_v1  ;;  %v886_v5 = vld [vmem:[#allocation7 + $0x8] sm:$0xff]  ;;  %vm3557_vm3 = vcmask 64512   ;;  %s7352_s3 = smov [#allocation11]  }
  0x5b   :  { %v110_v6 = vld [vmem:[#allocation5 + $0x10] sm:$0xff]  ;;  %v111_v7 = vld [vmem:[#allocation5 + $0x18] sm:$0xff]  ;;  %v6827_v8 = vpack.c.bf16 %v886_v5, %v885_v3  ;;  %v7483_v12 = vld [vmem:[#allocation2] sm:$0xff]  ;;  %s5708_s24 = sshll.u32 %s7352_s3, 4  ;;  %s5709_s24 = int_to_ptr.vmem [resolvable:$true] %s5708_s24 }
  0x5c   :  { %v6737_v9 = vpack.c.bf16 %v111_v7, %v110_v6  ;;  %v887_v10 = vld [vmem:[#allocation7 + $0x10] sm:$0xff]  ;;  %v888_v11 = vld [vmem:[#allocation7 + $0x18] sm:$0xff]  ;;  %6733 = vmatprep.subr.msk.bf16.mxu1 %vm7479_vm1, %v6731_v4  ;;  %6227 = vmatprep.mubr.msk.f32.mxu1 %vm140_vm0, %v7483_v12  ;;  %v112_v14 = vld [vmem:[#allocation5 + $0x20] sm:$0xff]  ;;  %s7313_s12 = scalar_lea.vmem %s5709_s24, 256  ;;  %p7318_p13 = scmp.lt.s32.totalorder %s5709_s24, %s5709_s24 }
  0x5d   :  { %v6833_v13 = vpack.c.bf16 %v888_v11, %v887_v10  ;;  %6829 = vmatprep.subr.msk.bf16.mxu0 %vm7479_vm1, %v6827_v8  ;;  %6736 = vmatpush3.bf16.xpose.msk.msra.mxu1 %vm7479_vm1, %v6731_v4  ;;  %v113_v15 = vld [vmem:[#allocation5 + $0x28] sm:$0xff]  ;;  %v114_v17 = vld [vmem:[#allocation5 + $0x30] sm:$0xff]  ;;  %v115_v18 = vld [vmem:[#allocation5 + $0x38] sm:$0xff]  ;;  %p7314_p12 = scmp.ne.s32.totalorder %s5709_s24, %s7313_s12  ;;  %p7319_p0 = scmp.lt.s32.totalorder %s7313_s12, %s7313_s12 }
  0x5e   :  { %6832 = vmatpush3.bf16.xpose.msk.msra.mxu0 %vm7479_vm1, %v6827_v8  ;;  %6739 = vmatprep.subr.msk.bf16.mxu1 %vm7479_vm1, %v6737_v9  ;;  %v6743_v16 = vpack.c.bf16 %v113_v15, %v112_v14  ;;  %v7507_v19 = vld [vmem:[#allocation2 + $0x8] sm:$0xff]  ;;  %v893_v20 = vld [vmem:[#allocation7 + $0x40] sm:$0xff]  ;;  %v6749_v22 = vpack.c.bf16 %v115_v18, %v114_v17  ;;  %v895_v24 = vld [vmem:[#allocation7 + $0x50] sm:$0xff] }
  0x5f   :  { %6835 = vmatprep.subr.msk.bf16.mxu0 %vm7479_vm1, %v6833_v13  ;;  %6315 = vmatprep.mubr.msk.f32.mxu0 %vm140_vm0, %v7483_v12  ;;  %v894_v21 = vld [vmem:[#allocation7 + $0x48] sm:$0xff]  ;;  %v896_v25 = vld [vmem:[#allocation7 + $0x58] sm:$0xff]  ;;  %v7509_v26 = vld [vmem:[#allocation2 + $0x10] sm:$0xff]  ;;  %p7320_p1 = por %p7319_p0, %p7318_p13 }
  0x60   :  { %v6851_v23 = vpack.c.bf16 %v894_v21, %v893_v20  ;;  %v6857_v27 = vpack.c.bf16 %v896_v25, %v895_v24  ;;  %v7523_v28 = vld [vmem:[#allocation2 + $0x20] sm:$0xff]  ;;  %v117_v30 = vld [vmem:[#allocation5 + $0x48] sm:$0xff]  ;;  %v118_v35 = vld [vmem:[#allocation5 + $0x50] sm:$0xff] }
  0x61   :  { %v116_v29 = vld [vmem:[#allocation5 + $0x40] sm:$0xff]  ;;  %v902_v32 = vld [vmem:[#allocation7 + $0x88] sm:$0xff]  ;;  %v119_v36 = vld [vmem:[#allocation5 + $0x58] sm:$0xff]  ;;  %p7321_p2 = pnand %p7320_p1, %p7314_p12 }
  0x62   :  { %v901_v31 = vld [vmem:[#allocation7 + $0x80] sm:$0xff]  ;;  %v6755_v33 = vpack.c.bf16 %v117_v30, %v116_v29  ;;  %v7539_v37 = vld [vmem:[#allocation2 + $0x18] sm:$0xff]  ;;  %v903_v38 = vld [vmem:[#allocation7 + $0x90] sm:$0xff]  ;;  %v6761_v40 = vpack.c.bf16 %v119_v36, %v118_v35 }
  0x63   :  { %v6875_v34 = vpack.c.bf16 %v902_v32, %v901_v31  ;;  %v904_v39 = vld [vmem:[#allocation7 + $0x98] sm:$0xff]  ;;  %v7547_v42 = vld [vmem:[#allocation2 + $0x28] sm:$0xff]  ;;  %v7551_v43 = vld [vmem:[#allocation2 + $0x40] sm:$0xff] }
  0x64   :  { %v6881_v41 = vpack.c.bf16 %v904_v39, %v903_v38  ;;  %v120_v44 = vld [vmem:[#allocation5 + $0x60] sm:$0xff]  ;;  %v121_v45 = vld [vmem:[#allocation5 + $0x68] sm:$0xff]  ;;  %v122_v50 = vld [vmem:[#allocation5 + $0x70] sm:$0xff] }
  0x65   :  { %6742 = vmatpush3.bf16.xpose.msk.msra.mxu1 %vm7479_vm1, %v6737_v9  ;;  %v909_v46 = vld [vmem:[#allocation7 + $0xc0] sm:$0xff]  ;;  %v910_v47 = vld [vmem:[#allocation7 + $0xc8] sm:$0xff]  ;;  %v6767_v48 = vpack.c.bf16 %v121_v45, %v120_v44  ;;  %v123_v51 = vld [vmem:[#allocation5 + $0x78] sm:$0xff] }
  0x66   :  { %6838 = vmatpush3.bf16.xpose.msk.msra.mxu0 %vm7479_vm1, %v6833_v13  ;;  %6745 = vmatprep.subr.msk.bf16.mxu1 %vm7479_vm1, %v6743_v16  ;;  %v6899_v49 = vpack.c.bf16 %v910_v47, %v909_v46  ;;  %v911_v52 = vld [vmem:[#allocation7 + $0xd0] sm:$0xff]  ;;  %v912_v53 = vld [vmem:[#allocation7 + $0xd8] sm:$0xff]  ;;  %v6773_v54 = vpack.c.bf16 %v123_v51, %v122_v50  ;;  %v7577_v57 = vld [vmem:[#allocation2 + $0x48] sm:$0xff] }
  0x67   :  { %6853 = vmatprep.subr.msk.bf16.mxu0 %vm7479_vm1, %v6851_v23  ;;  %v7569_v55 = vld [vmem:[#allocation2 + $0x30] sm:$0xff]  ;;  %v6905_v56 = vpack.c.bf16 %v912_v53, %v911_v52  ;;  %v7581_v58 = vld [vmem:[#allocation2 + $0x60] sm:$0xff]  ;;  %v125_v60 = vld [vmem:[#allocation5 + $0x88] sm:$0xff] }
  0x68   :  { %v124_v59 = vld [vmem:[#allocation5 + $0x80] sm:$0xff]  ;;  %v1614_v62 = vld [vmem:[#allocation8 + $0x8] sm:$0xff]  ;;  %v126_v2 = vld [vmem:[#allocation5 + $0x90] sm:$0xff] }
  0x69   :  { %v1613_v61 = vld [vmem:[#allocation8] sm:$0xff]  ;;  %v6779_v63 = vpack.c.bf16 %v125_v60, %v124_v59  ;;  %v127_v3 = vld [vmem:[#allocation5 + $0x98] sm:$0xff]  ;;  %v1615_v5 = vld [vmem:[#allocation8 + $0x10] sm:$0xff] }
  0x6a   :  { %v6923_v1 = vpack.c.bf16 %v1614_v62, %v1613_v61  ;;  %v7599_v4 = vld [vmem:[#allocation2 + $0x38] sm:$0xff]  ;;  %v6785_v7 = vpack.c.bf16 %v127_v3, %v126_v2  ;;  %v7607_v9 = vld [vmem:[#allocation2 + $0x68] sm:$0xff]  ;;  %v128_v10 = vld [vmem:[#allocation5 + $0xa0] sm:$0xff] }
  0x6b   :  { %v1616_v6 = vld [vmem:[#allocation8 + $0x18] sm:$0xff]  ;;  %v129_v11 = vld [vmem:[#allocation5 + $0xa8] sm:$0xff]  ;;  %v1621_v13 = vld [vmem:[#allocation8 + $0x40] sm:$0xff] }
  0x6c   :  { %6228 = vmatmul.mubr.msk.f32.vlgmr.msra.gmra.mrb[0].mxu1 %vm140_vm0, %v7507_v19  ;;  %v6929_v8 = vpack.c.bf16 %v1616_v6, %v1615_v5  ;;  %v1622_v14 = vld [vmem:[#allocation8 + $0x48] sm:$0xff]  ;;  %v6791_v15 = vpack.c.bf16 %v129_v11, %v128_v10  ;;  %v130_v17 = vld [vmem:[#allocation5 + $0xb0] sm:$0xff]  ;;  %v131_v18 = vld [vmem:[#allocation5 + $0xb8] sm:$0xff] }
  0x6d   :  { %6316 = vmatmul.mubr.msk.f32.vlgmr.msra.gmra.mrb[0].mxu0 %vm140_vm0, %v7507_v19  ;;  %6748 = vmatpush3.bf16.xpose.msk.msra.mxu1 %vm7479_vm1, %v6743_v16  ;;  %v6947_v16 = vpack.c.bf16 %v1622_v14, %v1621_v13  ;;  %v1624_v20 = vld [vmem:[#allocation8 + $0x58] sm:$0xff]  ;;  %v6797_v21 = vpack.c.bf16 %v131_v18, %v130_v17  ;;  %v132_v24 = vld [vmem:[#allocation5 + $0xc0] sm:$0xff]  ;;  %v133_v25 = vld [vmem:[#allocation5 + $0xc8] sm:$0xff] }
  0x6e   :  { %6751 = vmatprep.subr.msk.bf16.mxu1 %vm7479_vm1, %v6749_v22  ;;  %6238 = vmatprep.mubr.msk.f32.mxu1 %vm140_vm0, %v7509_v26  ;;  %v1630_v29 = vld [vmem:[#allocation8 + $0x88] sm:$0xff]  ;;  %v6803_v30 = vpack.c.bf16 %v133_v25, %v132_v24  ;;  %v135_v32 = vld [vmem:[#allocation5 + $0xd8] sm:$0xff]  ;;  %v136_v38 = vld [vmem:[#allocation5 + $0xe0] sm:$0xff] }
  0x6f   :  { %6856 = vmatpush3.bf16.xpose.msk.msra.mxu0 %vm7479_vm1, %v6851_v23  ;;  %6337 = vmatprep.mubr.msk.f32.mxu0 %vm140_vm0, %v7523_v28  ;;  %v137_v39 = vld [vmem:[#allocation5 + $0xe8] sm:$0xff]  ;;  %v139_v46 = vld [vmem:[#allocation5 + $0xf8] sm:$0xff]  ;;  %v889_v51 = vld [vmem:[#allocation7 + $0x20] sm:$0xff] }
  0x70   :  { %6859 = vmatprep.subr.msk.bf16.mxu0 %vm7479_vm1, %v6857_v27  ;;  %v6815_v44 = vpack.c.bf16 %v137_v39, %v136_v38  ;;  %v1640_v47 = vld [vmem:[#allocation8 + $0xd8] sm:$0xff]  ;;  %v890_v52 = vld [vmem:[#allocation7 + $0x28] sm:$0xff]  ;;  %v897_v60 = vld [vmem:[#allocation7 + $0x60] sm:$0xff] }
  0x71   :  { %v6839_v53 = vpack.c.bf16 %v890_v52, %v889_v51  ;;  %v7704_v59 = vld [vmem:[#allocation2 + $0x78] sm:$0xff]  ;;  %v898_v61 = vld [vmem:[#allocation7 + $0x68] sm:$0xff]  ;;  %v905_v3 = vld [vmem:[#allocation7 + $0xa0] sm:$0xff] }
  0x72   :  { %v6863_v62 = vpack.c.bf16 %v898_v61, %v897_v60  ;;  %v906_v5 = vld [vmem:[#allocation7 + $0xa8] sm:$0xff]  ;;  %v913_v10 = vld [vmem:[#allocation7 + $0xe0] sm:$0xff]  ;;  %v915_v14 = vld [vmem:[#allocation7 + $0xf0] sm:$0xff] }
  0x73   :  { %v6887_v6 = vpack.c.bf16 %v906_v5, %v905_v3  ;;  %v914_v11 = vld [vmem:[#allocation7 + $0xe8] sm:$0xff]  ;;  %v1617_v17 = vld [vmem:[#allocation8 + $0x20] sm:$0xff] }
  0x74   :  { %v6911_v13 = vpack.c.bf16 %v914_v11, %v913_v10  ;;  %v1618_v18 = vld [vmem:[#allocation8 + $0x28] sm:$0xff]  ;;  %v1625_v24 = vld [vmem:[#allocation8 + $0x60] sm:$0xff] }
  0x75   :  { %6754 = vmatpush3.bf16.xpose.msk.msra.mxu1 %vm7479_vm1, %v6749_v22  ;;  %v7627_v22 = vld [vmem:[#allocation2 + $0x50] sm:$0xff]  ;;  %v1626_v25 = vld [vmem:[#allocation8 + $0x68] sm:$0xff] }
  0x76   :  { %6757 = vmatprep.subr.msk.bf16.mxu1 %vm7479_vm1, %v6755_v33 }
  0x77   :  { %6862 = vmatpush3.bf16.xpose.msk.msra.mxu0 %vm7479_vm1, %v6857_v27  ;;  %v1629_v27 = vld [vmem:[#allocation8 + $0x80] sm:$0xff] }
  0x78   :  { %6877 = vmatprep.subr.msk.bf16.mxu0 %vm7479_vm1, %v6875_v34  ;;  %v6971_v31 = vpack.c.bf16 %v1630_v29, %v1629_v27  ;;  %v6959_v27 = vpack.c.bf16 %v1626_v25, %v1625_v24  ;;  %v1627_v29 = vld [vmem:[#allocation8 + $0x70] sm:$0xff] }
  0x7c   :  { %6239 = vmatmul.mubr.msk.f32.vlgmr.msra.gmra.mrb[2].mxu1 %vm140_vm0, %v7539_v37 }
  0x7d   :  { %6760 = vmatpush3.bf16.xpose.msk.msra.mxu1 %vm7479_vm1, %v6755_v33  ;;  %6249 = vmatprep.mubr.msk.f32.mxu1 %vm140_vm0, %v7523_v28  ;;  %v1631_v33 = vld [vmem:[#allocation8 + $0x90] sm:$0xff] }
  0x7e   :  { %6763 = vmatprep.subr.msk.bf16.mxu1 %vm7479_vm1, %v6761_v40  ;;  %6338 = vmatmul.mubr.msk.f32.vlgmr.msra.gmra.mrb[2].mxu0 %vm140_vm0, %v7547_v42 }
  0x7f   :  { %6880 = vmatpush3.bf16.xpose.msk.msra.mxu0 %vm7479_vm1, %v6875_v34  ;;  %6359 = vmatprep.mubr.msk.f32.mxu0 %vm140_vm0, %v7551_v43  ;;  %v1632_v34 = vld [vmem:[#allocation8 + $0x98] sm:$0xff] }
  0x80   :  { %6883 = vmatprep.subr.msk.bf16.mxu0 %vm7479_vm1, %v6881_v41  ;;  %v6977_v36 = vpack.c.bf16 %v1632_v34, %v1631_v33  ;;  %v1635_v33 = vld [vmem:[#allocation8 + $0xb0] sm:$0xff] }
  0x85   :  { %6766 = vmatpush3.bf16.xpose.msk.msra.mxu1 %vm7479_vm1, %v6761_v40  ;;  %v1637_v40 = vld [vmem:[#allocation8 + $0xc0] sm:$0xff] }
  0x86   :  { %6769 = vmatprep.subr.msk.bf16.mxu1 %vm7479_vm1, %v6767_v48 }
  0x87   :  { %6886 = vmatpush3.bf16.xpose.msk.msra.mxu0 %vm7479_vm1, %v6881_v41  ;;  %v1638_v41 = vld [vmem:[#allocation8 + $0xc8] sm:$0xff] }
  0x88   :  { %6901 = vmatprep.subr.msk.bf16.mxu0 %vm7479_vm1, %v6899_v49  ;;  %v6995_v45 = vpack.c.bf16 %v1638_v41, %v1637_v40 }
  0x8c   :  { %6250 = vmatmul.mubr.msk.f32.vlgmr.msra.gmra.mrb[4].mxu1 %vm140_vm0, %v7547_v42 }
  0x8d   :  { %6772 = vmatpush3.bf16.xpose.msk.msra.mxu1 %vm7479_vm1, %v6767_v48  ;;  %6260 = vmatprep.mubr.msk.f32.mxu1 %vm140_vm0, %v7569_v55 }
  0x8e   :  { %6775 = vmatprep.subr.msk.bf16.mxu1 %vm7479_vm1, %v6773_v54  ;;  %6360 = vmatmul.mubr.msk.f32.vlgmr.msra.gmra.mrb[4].mxu0 %vm140_vm0, %v7577_v57 }
  0x8f   :  { %6904 = vmatpush3.bf16.xpose.msk.msra.mxu0 %vm7479_vm1, %v6899_v49  ;;  %6381 = vmatprep.mubr.msk.f32.mxu0 %vm140_vm0, %v7581_v58  ;;  %v7679_v49 = vld [vmem:[#allocation2 + $0x70] sm:$0xff] }
  0x90   :  { %6907 = vmatprep.subr.msk.bf16.mxu0 %vm7479_vm1, %v6905_v56 }
  0x95   :  { %6778 = vmatpush3.bf16.xpose.msk.msra.mxu1 %vm7479_vm1, %v6773_v54  ;;  %v891_v54 = vld [vmem:[#allocation7 + $0x30] sm:$0xff] }
  0x96   :  { %6781 = vmatprep.subr.msk.bf16.mxu1 %vm7479_vm1, %v6779_v63 }
  0x97   :  { %6910 = vmatpush3.bf16.xpose.msk.msra.mxu0 %vm7479_vm1, %v6905_v56  ;;  %v892_v56 = vld [vmem:[#allocation7 + $0x38] sm:$0xff] }
  0x98   :  { %6925 = vmatprep.subr.msk.bf16.mxu0 %vm7479_vm1, %v6923_v1 }
  0x9c   :  { %6261 = vmatmul.mubr.msk.f32.vlgmr.msra.gmra.mrb[6].mxu1 %vm140_vm0, %v7599_v4 }
  0x9d   :  { %6784 = vmatpush3.bf16.xpose.msk.msra.mxu1 %vm7479_vm1, %v6779_v63  ;;  %6271 = vmatprep.mubr.msk.f32.mxu1 %vm140_vm0, %v7551_v43  ;;  %v899_v63 = vld [vmem:[#allocation7 + $0x70] sm:$0xff] }
  0x9e   :  { %6787 = vmatprep.subr.msk.bf16.mxu1 %vm7479_vm1, %v6785_v7  ;;  %6382 = vmatmul.mubr.msk.f32.vlgmr.msra.gmra.mrb[6].mxu0 %vm140_vm0, %v7607_v9 }
  0x9f   :  { %6928 = vmatpush3.bf16.xpose.msk.msra.mxu0 %vm7479_vm1, %v6923_v1  ;;  %6403 = vmatprep.mubr.msk.f32.mxu0 %vm140_vm0, %v7483_v12  ;;  %v1623_v12 = vld [vmem:[#allocation8 + $0x50] sm:$0xff]  ;;  %v900_v1 = vld [vmem:[#allocation7 + $0x78] sm:$0xff] }
  0xa0   :  { %6931 = vmatprep.subr.msk.bf16.mxu0 %vm7479_vm1, %v6929_v8  ;;  %v6953_v23 = vpack.c.bf16 %v1624_v20, %v1623_v12  ;;  %v6869_v2 = vpack.c.bf16 %v900_v1, %v899_v63  ;;  %v6935_v12 = vpack.c.bf16 %v1618_v18, %v1617_v17  ;;  %v1619_v20 = vld [vmem:[#allocation8 + $0x30] sm:$0xff] }
  0xa5   :  { %6790 = vmatpush3.bf16.xpose.msk.msra.mxu1 %vm7479_vm1, %v6785_v7  ;;  %v907_v7 = vld [vmem:[#allocation7 + $0xb0] sm:$0xff] }
  0xa6   :  { %6793 = vmatprep.subr.msk.bf16.mxu1 %vm7479_vm1, %v6791_v15 }
  0xa7   :  { %6934 = vmatpush3.bf16.xpose.msk.msra.mxu0 %vm7479_vm1, %v6929_v8  ;;  %v908_v8 = vld [vmem:[#allocation7 + $0xb8] sm:$0xff] }
  0xa8   :  { %6949 = vmatprep.subr.msk.bf16.mxu0 %vm7479_vm1, %v6947_v16 }
  0xac   :  { %6272 = vmatmul.mubr.msk.f32.vlgmr.msra.gmra.mrb[8].mxu1 %vm140_vm0, %v7577_v57 }
  0xad   :  { %6796 = vmatpush3.bf16.xpose.msk.msra.mxu1 %vm7479_vm1, %v6791_v15  ;;  %6282 = vmatprep.mubr.msk.f32.mxu1 %vm140_vm0, %v7627_v22  ;;  %v916_v15 = vld [vmem:[#allocation7 + $0xf8] sm:$0xff] }
  0xae   :  { %6799 = vmatprep.subr.msk.bf16.mxu1 %vm7479_vm1, %v6797_v21  ;;  %6404 = vmatmul.mubr.msk.f32.vlgmr.msra.gmra.mrb[8].mxu0 %vm140_vm0, %v7507_v19  ;;  %v134_v19 = vld [vmem:[#allocation5 + $0xd0] sm:$0xff] }
  0xaf   :  { %6952 = vmatpush3.bf16.xpose.msk.msra.mxu0 %vm7479_vm1, %v6947_v16  ;;  %6425 = vmatprep.mubr.msk.f32.mxu0 %vm140_vm0, %v7523_v28  ;;  %v7653_v28 = vld [vmem:[#allocation2 + $0x58] sm:$0xff]  ;;  %v6809_v35 = vpack.c.bf16 %v135_v32, %v134_v19  ;;  %v6917_v16 = vpack.c.bf16 %v916_v15, %v915_v14  ;;  %v1634_v19 = vld [vmem:[#allocation8 + $0xa8] sm:$0xff] }
  0xb0   :  { %6955 = vmatprep.subr.msk.bf16.mxu0 %vm7479_vm1, %v6953_v23 }
  0xb5   :  { %6802 = vmatpush3.bf16.xpose.msk.msra.mxu1 %vm7479_vm1, %v6797_v21  ;;  %v1620_v21 = vld [vmem:[#allocation8 + $0x38] sm:$0xff] }
  0xb6   :  { %6805 = vmatprep.subr.msk.bf16.mxu1 %vm7479_vm1, %v6803_v30 }
  0xb7   :  { %6958 = vmatpush3.bf16.xpose.msk.msra.mxu0 %vm7479_vm1, %v6953_v23  ;;  %v6941_v23 = vpack.c.bf16 %v1620_v21, %v1619_v20 }
  0xb8   :  { %6973 = vmatprep.subr.msk.bf16.mxu0 %vm7479_vm1, %v6971_v31 }
  0xbc   :  { %6283 = vmatmul.mubr.msk.f32.vlgmr.msra.gmra.mrb[10].mxu1 %vm140_vm0, %v7653_v28 }
  0xbd   :  { %6808 = vmatpush3.bf16.xpose.msk.msra.mxu1 %vm7479_vm1, %v6803_v30  ;;  %6293 = vmatprep.mubr.msk.f32.mxu1 %vm140_vm0, %v7581_v58  ;;  %v1628_v30 = vld [vmem:[#allocation8 + $0x78] sm:$0xff] }
  0xbe   :  { %6811 = vmatprep.subr.msk.bf16.mxu1 %vm7479_vm1, %v6809_v35  ;;  %6426 = vmatmul.mubr.msk.f32.vlgmr.msra.gmra.mrb[10].mxu0 %vm140_vm0, %v7547_v42  ;;  %v138_v42 = vld [vmem:[#allocation5 + $0xf0] sm:$0xff] }
  0xbf   :  { %6976 = vmatpush3.bf16.xpose.msk.msra.mxu0 %vm7479_vm1, %v6971_v31  ;;  %6447 = vmatprep.mubr.msk.f32.mxu0 %vm140_vm0, %v7551_v43  ;;  %v1639_v43 = vld [vmem:[#allocation8 + $0xd0] sm:$0xff]  ;;  %v6821_v48 = vpack.c.bf16 %v139_v46, %v138_v42  ;;  %v6965_v31 = vpack.c.bf16 %v1628_v30, %v1627_v29 }
  0xc0   :  { %6979 = vmatprep.subr.msk.bf16.mxu0 %vm7479_vm1, %v6977_v36  ;;  %v7001_v50 = vpack.c.bf16 %v1640_v47, %v1639_v43 }
  0xc5   :  { %6814 = vmatpush3.bf16.xpose.msk.msra.mxu1 %vm7479_vm1, %v6809_v35  ;;  %v1641_v35 = vld [vmem:[#allocation8 + $0xe0] sm:$0xff] }
  0xc6   :  { %6817 = vmatprep.subr.msk.bf16.mxu1 %vm7479_vm1, %v6815_v44 }
  0xc7   :  { %6982 = vmatpush3.bf16.xpose.msk.msra.mxu0 %vm7479_vm1, %v6977_v36  ;;  %v1642_v36 = vld [vmem:[#allocation8 + $0xe8] sm:$0xff] }
  0xc8   :  { %6997 = vmatprep.subr.msk.bf16.mxu0 %vm7479_vm1, %v6995_v45  ;;  %v7007_v41 = vpack.c.bf16 %v1642_v36, %v1641_v35 }
  0xcc   :  { %6294 = vmatmul.mubr.msk.f32.vlgmr.msra.gmra.mrb[12].mxu1 %vm140_vm0, %v7607_v9 }
  0xcd   :  { %6820 = vmatpush3.bf16.xpose.msk.msra.mxu1 %vm7479_vm1, %v6815_v44  ;;  %6304 = vmatprep.mubr.msk.f32.mxu1 %vm140_vm0, %v7679_v49 }
  0xce   :  { %6823 = vmatprep.subr.msk.bf16.mxu1 %vm7479_vm1, %v6821_v48  ;;  %6448 = vmatmul.mubr.msk.f32.vlgmr.msra.gmra.mrb[12].mxu0 %vm140_vm0, %v7577_v57  ;;  %v7350_v57 = vmov 0.0  }
  0xcf   :  { %7000 = vmatpush3.bf16.xpose.msk.msra.mxu0 %vm7479_vm1, %v6995_v45  ;;  %6469 = vmatprep.mubr.msk.f32.mxu0 %vm140_vm0, %v7581_v58  ;;  %v6845_v58 = vpack.c.bf16 %v892_v56, %v891_v54 }
  0xd0   :  { %7003 = vmatprep.subr.msk.bf16.mxu0 %vm7479_vm1, %v7001_v50 }
  0xd5   :  { %6826 = vmatpush3.bf16.xpose.msk.msra.mxu1 %vm7479_vm1, %v6821_v48 }
  0xd6   :  { %6841 = vmatprep.subr.msk.bf16.mxu1 %vm7479_vm1, %v6839_v53 }
  0xd7   :  { %7006 = vmatpush3.bf16.xpose.msk.msra.mxu0 %vm7479_vm1, %v7001_v50 }
  0xd8   :  { %6483 = vmatprep.subr.mxu0 %v7350_v57 }
  0xdc   :  { %6305 = vmatmul.mubr.msk.f32.vlgmr.msra.gmra.mrb[14].mxu1 %vm140_vm0, %v7704_v59 }
  0xdd   :  { %6844 = vmatpush3.bf16.xpose.msk.msra.mxu1 %vm7479_vm1, %v6839_v53  ;;  %6326 = vmatprep.mubr.msk.f32.mxu1 %vm140_vm0, %v7509_v26 }
  0xde   :  { %6847 = vmatprep.subr.msk.bf16.mxu1 %vm7479_vm1, %v6845_v58  ;;  %6470 = vmatmul.mubr.msk.f32.vlgmr.msra.gmra.mrb[14].mxu0 %vm140_vm0, %v7607_v9  ;;  %v6893_v9 = vpack.c.bf16 %v908_v8, %v907_v7 }
  0xdf   :  { %6485 = vmatprep.mubr.msk.f32.mxu0 %vm7351_vm2, %v7350_v57 }
  0xe5   :  { %6850 = vmatpush3.bf16.xpose.msk.msra.mxu1 %vm7479_vm1, %v6845_v58 }
  0xe6   :  { %6865 = vmatprep.subr.msk.bf16.mxu1 %vm7479_vm1, %v6863_v62 }
  0xec   :  { %6327 = vmatmul.mubr.msk.f32.vlgmr.msra.gmra.mrb[16].mxu1 %vm140_vm0, %v7539_v37 }
  0xed   :  { %6868 = vmatpush3.bf16.xpose.msk.msra.mxu1 %vm7479_vm1, %v6863_v62  ;;  %6348 = vmatprep.mubr.msk.f32.mxu1 %vm140_vm0, %v7569_v55 }
  0xee   :  { %6871 = vmatprep.subr.msk.bf16.mxu1 %vm7479_vm1, %v6869_v2 }
  0xf5   :  { %6874 = vmatpush3.bf16.xpose.msk.msra.mxu1 %vm7479_vm1, %v6869_v2 }
  0xf6   :  { %6889 = vmatprep.subr.msk.bf16.mxu1 %vm7479_vm1, %v6887_v6 }
  0xfc   :  { %6349 = vmatmul.mubr.msk.f32.vlgmr.msra.gmra.mrb[18].mxu1 %vm140_vm0, %v7599_v4 }
  0xfd   :  { %6892 = vmatpush3.bf16.xpose.msk.msra.mxu1 %vm7479_vm1, %v6887_v6  ;;  %6370 = vmatprep.mubr.msk.f32.mxu1 %vm140_vm0, %v7627_v22 }
  0xfe   :  { %6895 = vmatprep.subr.msk.bf16.mxu1 %vm7479_vm1, %v6893_v9 }
 0x105   :  { %6898 = vmatpush3.bf16.xpose.msk.msra.mxu1 %vm7479_vm1, %v6893_v9 }
 0x106   :  { %6913 = vmatprep.subr.msk.bf16.mxu1 %vm7479_vm1, %v6911_v13 }
 0x10c   :  { %6371 = vmatmul.mubr.msk.f32.vlgmr.msra.gmra.mrb[20].mxu1 %vm140_vm0, %v7653_v28 }
 0x10d   :  { %6916 = vmatpush3.bf16.xpose.msk.msra.mxu1 %vm7479_vm1, %v6911_v13  ;;  %6392 = vmatprep.mubr.msk.f32.mxu1 %vm140_vm0, %v7679_v49 }
 0x10e   :  { %6919 = vmatprep.subr.msk.bf16.mxu1 %vm7479_vm1, %v6917_v16 }
 0x115   :  { %6922 = vmatpush3.bf16.xpose.msk.msra.mxu1 %vm7479_vm1, %v6917_v16 }
 0x116   :  { %6937 = vmatprep.subr.msk.bf16.mxu1 %vm7479_vm1, %v6935_v12 }
 0x11c   :  { %6393 = vmatmul.mubr.msk.f32.vlgmr.msra.gmra.mrb[22].mxu1 %vm140_vm0, %v7704_v59 }
 0x11d   :  { %6940 = vmatpush3.bf16.xpose.msk.msra.mxu1 %vm7479_vm1, %v6935_v12  ;;  %6414 = vmatprep.mubr.msk.f32.mxu1 %vm140_vm0, %v7509_v26  ;;  %v1633_v26 = vld [vmem:[#allocation8 + $0xa0] sm:$0xff] }
 0x11e   :  { %6943 = vmatprep.subr.msk.bf16.mxu1 %vm7479_vm1, %v6941_v23  ;;  %v6983_v32 = vpack.c.bf16 %v1634_v19, %v1633_v26 }
 0x125   :  { %6946 = vmatpush3.bf16.xpose.msk.msra.mxu1 %vm7479_vm1, %v6941_v23 }
 0x126   :  { %6961 = vmatprep.subr.msk.bf16.mxu1 %vm7479_vm1, %v6959_v27 }
 0x12c   :  { %6415 = vmatmul.mubr.msk.f32.vlgmr.msra.gmra.mrb[24].mxu1 %vm140_vm0, %v7539_v37  ;;  %v1636_v37 = vld [vmem:[#allocation8 + $0xb8] sm:$0xff] }
 0x12d   :  { %6964 = vmatpush3.bf16.xpose.msk.msra.mxu1 %vm7479_vm1, %v6959_v27  ;;  %6436 = vmatprep.mubr.msk.f32.mxu1 %vm140_vm0, %v7569_v55  ;;  %v6989_v34 = vpack.c.bf16 %v1636_v37, %v1635_v33 }
 0x12e   :  { %6967 = vmatprep.subr.msk.bf16.mxu1 %vm7479_vm1, %v6965_v31 }
 0x135   :  { %6970 = vmatpush3.bf16.xpose.msk.msra.mxu1 %vm7479_vm1, %v6965_v31 }
 0x136   :  { %6985 = vmatprep.subr.msk.bf16.mxu1 %vm7479_vm1, %v6983_v32 }
 0x13c   :  { %6437 = vmatmul.mubr.msk.f32.vlgmr.msra.gmra.mrb[26].mxu1 %vm140_vm0, %v7599_v4  ;;  %v1643_v4 = vld [vmem:[#allocation8 + $0xf0] sm:$0xff] }
 0x13d   :  { %6988 = vmatpush3.bf16.xpose.msk.msra.mxu1 %vm7479_vm1, %v6983_v32  ;;  %6458 = vmatprep.mubr.msk.f32.mxu1 %vm140_vm0, %v7627_v22  ;;  %v1644_v22 = vld [vmem:[#allocation8 + $0xf8] sm:$0xff] }
 0x13e   :  { %6991 = vmatprep.subr.msk.bf16.mxu1 %vm7479_vm1, %v6989_v34  ;;  %v7013_v44 = vpack.c.bf16 %v1644_v22, %v1643_v4 }
 0x13f   :  { %v6229_v55 = vpop.f32.mrb[0].mxu1 }
 0x140   :  { %v6317_v38 = vpop.f32.mrb[0].mxu0  ;;  %v225_v39 = vpop.f32.mrb[1].mxu1 }
 0x141   :  { %v995_v40 = vpop.f32.mrb[1].mxu0 }
 0x142   :  { %6484 = vmatpush3.xpose.msk.msra.mxu0 %vm140_vm0, %v995_v40 }
 0x143   :  { %6493 = vmatprep.subr.mxu0 %v7350_v57 }
 0x145   :  { %6486 = vmatmul.mubr.msk.f32.vlgmr.msra.gmra.mrb[16].mxu0 %vm140_vm0, %v225_v39  ;;  %6994 = vmatpush3.bf16.xpose.msk.msra.mxu1 %vm7479_vm1, %v6989_v34 }
 0x146   :  { %7009 = vmatprep.subr.msk.bf16.mxu1 %vm7479_vm1, %v7007_v41  ;;  %6495 = vmatprep.mubr.msk.f32.mxu0 %vm7351_vm2, %v7350_v57 }
 0x14c   :  { %6459 = vmatmul.mubr.msk.f32.vlgmr.msra.gmra.mrb[28].mxu1 %vm140_vm0, %v7653_v28 }
 0x14d   :  { %7012 = vmatpush3.bf16.xpose.msk.msra.mxu1 %vm7479_vm1, %v7007_v41  ;;  %6480 = vmatprep.mubr.msk.f32.mxu1 %vm140_vm0, %v7679_v49 }
 0x14e   :  { %7015 = vmatprep.subr.msk.bf16.mxu1 %vm7479_vm1, %v7013_v44 }
 0x14f   :  { %v6240_v45 = vpop.f32.mrb[2].mxu1 }
 0x150   :  { %v318_v42 = vpop.f32.mrb[3].mxu1 }
 0x151   :  { %v6339_v46 = vpop.f32.mrb[2].mxu0 }
 0x152   :  { %v1169_v43 = vpop.f32.mrb[3].mxu0 }
 0x155   :  { %7018 = vmatpush3.bf16.xpose.msk.msra.mxu1 %vm7479_vm1, %v7013_v44 }
 0x156   :  { %6488 = vmatprep.subr.mxu1 %v7350_v57 }
 0x15c   :  { %6481 = vmatmul.mubr.msk.f32.vlgmr.msra.gmra.mrb[30].mxu1 %vm140_vm0, %v7704_v59 }
 0x15d   :  { %6489 = vmatpush3.xpose.msk.msra.mxu1 %vm140_vm0, %v6317_v38  ;;  %6490 = vmatprep.mubr.msk.f32.mxu1 %vm7351_vm2, %v7350_v57 }
 0x15e   :  { %6498 = vmatprep.subr.mxu1 %v7350_v57 }
 0x15f   :  { %v6251_v28 = vpop.f32.mrb[4].mxu1 }
 0x160   :  { %v411_v47 = vpop.f32.mrb[5].mxu1  ;;  %6491 = vmatmul.mubr.msk.f32.vlgmr.msra.gmra.mrb[32].mxu1 %vm140_vm0, %v6229_v55 }
 0x161   :  { %6500 = vmatprep.mubr.msk.f32.mxu1 %vm7351_vm2, %v7350_v57  ;;  %v6361_v48 = vpop.f32.mrb[4].mxu0 }
 0x162   :  { %v1343_v49 = vpop.f32.mrb[5].mxu0 }
 0x16f   :  { %v6262_v50 = vpop.f32.mrb[6].mxu1 }
 0x170   :  { %v504_v51 = vpop.f32.mrb[7].mxu1 }
 0x171   :  { %v6383_v52 = vpop.f32.mrb[6].mxu0 }
 0x172   :  { %v1517_v53 = vpop.f32.mrb[7].mxu0 }
 0x17f   :  { %v6273_v54 = vpop.f32.mrb[8].mxu1 }
 0x180   :  { %v597_v56 = vpop.f32.mrb[9].mxu1 }
 0x181   :  { %v7819_v59 = vpop.f32.mrb[8].mxu0 }
 0x182   :  { %v7821_v58 = vpop.f32.mrb[9].mxu0 }
 0x18f   :  { %v6284_v60 = vpop.f32.mrb[10].mxu1 }
 0x190   :  { %v690_v61 = vpop.f32.mrb[11].mxu1 }
 0x191   :  { %v7823_v62 = vpop.f32.mrb[10].mxu0 }
 0x192   :  { %v7825_v63 = vpop.f32.mrb[11].mxu0 }
 0x19f   :  { %v6295_v1 = vpop.f32.mrb[12].mxu1 }
 0x1a0   :  { %v783_v2 = vpop.f32.mrb[13].mxu1 }
 0x1a1   :  { %v7827_v3 = vpop.f32.mrb[12].mxu0 }
 0x1a2   :  { %v7829_v5 = vpop.f32.mrb[13].mxu0 }
 0x1af   :  { %v7831_v6 = vpop.f32.mrb[14].mxu1 }
 0x1b0   :  { %v7833_v7 = vpop.f32.mrb[15].mxu1 }
 0x1b1   :  { %v7835_v8 = vpop.f32.mrb[14].mxu0 }
 0x1b2   :  { %v7837_v9 = vpop.f32.mrb[15].mxu0 }
 0x1bf   :  { %v6328_v10 = vpop.f32.mrb[16].mxu1 }
 0x1c0   :  { %v1082_v11 = vpop.f32.mrb[17].mxu1  ;;  %6499 = vmatpush3.xpose.msk.msra.mxu1 %vm140_vm0, %v6328_v10 }
 0x1c1   :  { %6494 = vmatpush3.xpose.msk.msra.mxu0 %vm140_vm0, %v1082_v11  ;;  %6508 = vmatprep.subr.mxu1 %v7350_v57 }
 0x1c2   :  { %6503 = vmatprep.subr.mxu0 %v7350_v57 }
 0x1c3   :  { %6501 = vmatmul.mubr.msk.f32.vlgmr.msra.gmra.mrb[34].mxu1 %vm140_vm0, %v6240_v45 }
 0x1c4   :  { %6496 = vmatmul.mubr.msk.f32.vlgmr.msra.gmra.mrb[18].mxu0 %vm140_vm0, %v318_v42  ;;  %6509 = vmatpush3.xpose.msk.msra.mxu1 %vm140_vm0, %v6339_v46 }
 0x1c5   :  { %6504 = vmatpush3.xpose.msk.msra.mxu0 %vm140_vm0, %v1169_v43  ;;  %6510 = vmatprep.mubr.msk.f32.mxu1 %vm7351_vm2, %v7350_v57 }
 0x1c6   :  { %6505 = vmatprep.mubr.msk.f32.mxu0 %vm7351_vm2, %v7350_v57  ;;  %6518 = vmatprep.subr.mxu1 %v7350_v57 }
 0x1c7   :  { %6511 = vmatmul.mubr.msk.f32.vlgmr.msra.gmra.mrb[36].mxu1 %vm140_vm0, %v6251_v28  ;;  %6513 = vmatprep.subr.mxu0 %v7350_v57 }
 0x1c8   :  { %6506 = vmatmul.mubr.msk.f32.vlgmr.msra.gmra.mrb[20].mxu0 %vm140_vm0, %v411_v47  ;;  %6520 = vmatprep.mubr.msk.f32.mxu1 %vm7351_vm2, %v7350_v57 }
 0x1c9   :  { %6515 = vmatprep.mubr.msk.f32.mxu0 %vm7351_vm2, %v7350_v57 }
 0x1cf   :  { %v6350_v13 = vpop.f32.mrb[18].mxu1 }
 0x1d0   :  { %v1256_v14 = vpop.f32.mrb[19].mxu1  ;;  %6519 = vmatpush3.xpose.msk.msra.mxu1 %vm140_vm0, %v6350_v13 }
 0x1d1   :  { %6514 = vmatpush3.xpose.msk.msra.mxu0 %vm140_vm0, %v1256_v14  ;;  %6528 = vmatprep.subr.mxu1 %v7350_v57 }
 0x1d2   :  { %6523 = vmatprep.subr.mxu0 %v7350_v57 }
 0x1d3   :  { %6521 = vmatmul.mubr.msk.f32.vlgmr.msra.gmra.mrb[38].mxu1 %vm140_vm0, %v6262_v50 }
 0x1d4   :  { %6516 = vmatmul.mubr.msk.f32.vlgmr.msra.gmra.mrb[22].mxu0 %vm140_vm0, %v504_v51  ;;  %6529 = vmatpush3.xpose.msk.msra.mxu1 %vm140_vm0, %v6361_v48 }
 0x1d5   :  { %6524 = vmatpush3.xpose.msk.msra.mxu0 %vm140_vm0, %v1343_v49  ;;  %6530 = vmatprep.mubr.msk.f32.mxu1 %vm7351_vm2, %v7350_v57 }
 0x1d6   :  { %6525 = vmatprep.mubr.msk.f32.mxu0 %vm7351_vm2, %v7350_v57  ;;  %6538 = vmatprep.subr.mxu1 %v7350_v57 }
 0x1d7   :  { %6531 = vmatmul.mubr.msk.f32.vlgmr.msra.gmra.mrb[40].mxu1 %vm140_vm0, %v6273_v54  ;;  %6533 = vmatprep.subr.mxu0 %v7350_v57 }
 0x1d8   :  { %6526 = vmatmul.mubr.msk.f32.vlgmr.msra.gmra.mrb[24].mxu0 %vm140_vm0, %v597_v56  ;;  %6540 = vmatprep.mubr.msk.f32.mxu1 %vm7351_vm2, %v7350_v57 }
 0x1d9   :  { %6535 = vmatprep.mubr.msk.f32.mxu0 %vm7351_vm2, %v7350_v57 }
 0x1df   :  { %v6372_v15 = vpop.f32.mrb[20].mxu1 }
 0x1e0   :  { %v1430_v16 = vpop.f32.mrb[21].mxu1  ;;  %6539 = vmatpush3.xpose.msk.msra.mxu1 %vm140_vm0, %v6372_v15 }
 0x1e1   :  { %6534 = vmatpush3.xpose.msk.msra.mxu0 %vm140_vm0, %v1430_v16  ;;  %6548 = vmatprep.subr.mxu1 %v7350_v57 }
 0x1e2   :  { %6543 = vmatprep.subr.mxu0 %v7350_v57 }
 0x1e3   :  { %6541 = vmatmul.mubr.msk.f32.vlgmr.msra.gmra.mrb[42].mxu1 %vm140_vm0, %v6284_v60 }
 0x1e4   :  { %6536 = vmatmul.mubr.msk.f32.vlgmr.msra.gmra.mrb[26].mxu0 %vm140_vm0, %v690_v61  ;;  %6549 = vmatpush3.xpose.msk.msra.mxu1 %vm140_vm0, %v6383_v52 }
 0x1e5   :  { %6544 = vmatpush3.xpose.msk.msra.mxu0 %vm140_vm0, %v1517_v53  ;;  %6550 = vmatprep.mubr.msk.f32.mxu1 %vm7351_vm2, %v7350_v57 }
 0x1e6   :  { %6545 = vmatprep.mubr.msk.f32.mxu0 %vm7351_vm2, %v7350_v57  ;;  %6558 = vmatprep.subr.mxu1 %v7350_v57 }
 0x1e7   :  { %6551 = vmatmul.mubr.msk.f32.vlgmr.msra.gmra.mrb[44].mxu1 %vm140_vm0, %v6295_v1  ;;  %6553 = vmatprep.subr.mxu0 %v7350_v57 }
 0x1e8   :  { %6546 = vmatmul.mubr.msk.f32.vlgmr.msra.gmra.mrb[28].mxu0 %vm140_vm0, %v783_v2  ;;  %6560 = vmatprep.mubr.msk.f32.mxu1 %vm7351_vm2, %v7350_v57 }
 0x1e9   :  { %6555 = vmatprep.mubr.msk.f32.mxu0 %vm7351_vm2, %v7350_v57 }
 0x1ef   :  { %v6394_v17 = vpop.f32.mrb[22].mxu1 }
 0x1f0   :  { %v1604_v18 = vpop.f32.mrb[23].mxu1  ;;  %6559 = vmatpush3.xpose.msk.msra.mxu1 %vm140_vm0, %v6394_v17 }
 0x1f1   :  { %6554 = vmatpush3.xpose.msk.msra.mxu0 %vm140_vm0, %v1604_v18  ;;  %6568 = vmatprep.subr.mxu1 %v7350_v57 }
 0x1f2   :  { %6563 = vmatprep.subr.mxu0 %v7350_v57 }
 0x1f3   :  { %6561 = vmatmul.mubr.msk.f32.vlgmr.msra.gmra.mrb[46].mxu1 %vm140_vm0, %v7831_v6 }
 0x1f4   :  { %6556 = vmatmul.mubr.msk.f32.vlgmr.msra.gmra.mrb[30].mxu0 %vm140_vm0, %v7833_v7  ;;  %6569 = vmatpush3.msra.mxu1 %v7819_v59 }
 0x1f5   :  { %6564 = vmatpush3.msra.mxu0 %v7821_v58  ;;  %6565 = vmatprep.mubr.msk.f32.mxu0 %vm7351_vm2, %v7350_v57 }
 0x1f6   :  { %6573 = vmatprep.subr.mxu0 %v7350_v57  ;;  %6570 = vmatprep.mubr.msk.f32.mxu1 %vm7351_vm2, %v7350_v57 }
 0x1f7   :  { %6578 = vmatprep.subr.mxu1 %v7350_v57 }
 0x1ff   :  { %v7915_v12 = vpop.f32.mrb[24].mxu1 }
 0x200   :  { %v7917_v20 = vpop.f32.mrb[25].mxu1 }
 0x20f   :  { %v7919_v21 = vpop.f32.mrb[26].mxu1 }
 0x210   :  { %v7921_v23 = vpop.f32.mrb[27].mxu1 }
 0x218   :  { %v2413_v24 = vpop.f32.mrb[16].mxu0 }
 0x219   :  { %v6487_v25 = vpop.f32.mrb[17].mxu0  ;;  %v3558_v27 = vsel %vm3557_vm3, %v2413_v24, -inf }
 0x21a   :  { %3559 = vmax.xlane.f32.xlu0 %v3558_v27 }
 0x21f   :  { %v7924_v29 = vpop.f32.mrb[28].mxu1 }
 0x220   :  { %v7926_v30 = vpop.f32.mrb[29].mxu1 }
 0x22f   :  { %v7928_v31 = vpop.f32.mrb[30].mxu1 }
 0x230   :  { %v7930_v26 = vpop.f32.mrb[31].mxu1 }
 0x233   :  { %v2489_v19 = vpop.f32.mrb[32].mxu1 }
 0x234   :  { %v6492_v32 = vpop.f32.mrb[33].mxu1  ;;  %v3561_v33 = vsel %vm3557_vm3, %v2489_v19, -inf }
 0x235   :  { %3562 = vmax.xlane.f32.xlu0 %v3561_v33 }
 0x296   :  { %v7933_v37 = vpop.f32.mrb[34].mxu1 }
 0x297   :  { %v7935_v34 = vpop.f32.mrb[18].mxu0  ;;  %v6502_v55 = vpop.f32.mrb[35].mxu1  ;;  %v3567_v22 = vsel %vm3557_vm3, %v7933_v37, -inf }
 0x298   :  { %v6497_v35 = vpop.f32.mrb[19].mxu0  ;;  %v3564_v36 = vsel %vm3557_vm3, %v7935_v34, -inf }
 0x299   :  { %3565 = vmax.xlane.f32.xlu1 %v3564_v36 }
 0x29a   :  { %v7939_v38 = vpop.f32.mrb[36].mxu1 }
 0x29b   :  { %v7941_v39 = vpop.f32.mrb[20].mxu0  ;;  %v6512_v40 = vpop.f32.mrb[37].mxu1  ;;  %v3573_v44 = vsel %vm3557_vm3, %v7939_v38, -inf }
 0x29c   :  { %v6507_v41 = vpop.f32.mrb[21].mxu0  ;;  %v3570_v4 = vsel %vm3557_vm3, %v7941_v39, -inf }
 0x29d   :  { %3571 = vmax.xlane.f32.xlu0 %v3570_v4  ;;  %3568 = vmax.xlane.f32.xlu1 %v3567_v22 }
 0x2a1   :  { %3574 = vmax.xlane.f32.xlu1 %v3573_v44 }
 0x2a6   :  { %v7949_v45 = vpop.f32.mrb[38].mxu1 }
 0x2a7   :  { %v3560_v42 = vpop.xlane.xlu0 %3559  ;;  %v7951_v46 = vpop.f32.mrb[22].mxu0  ;;  %v3579_v43 = vsel %vm3557_vm3, %v7949_v45, -inf }
 0x2a8   :  { %v3606_v28 = vsub.f32 %v2413_v24, %v3560_v42  ;;  %v6522_v47 = vpop.f32.mrb[39].mxu1  ;;  %v6517_v48 = vpop.f32.mrb[23].mxu0  ;;  %3580 = vmax.xlane.f32.xlu1 %v3579_v43  ;;  %v3576_v49 = vsel %vm3557_vm3, %v7951_v46, -inf }
 0x2a9   :  { %3577 = vmax.xlane.f32.xlu0 %v3576_v49 }
 0x2aa   :  { %v7957_v50 = vpop.f32.mrb[40].mxu1  ;;  %v3622_v51 = vmul.f32 1.442695, %v3606_v28 }
 0x2ab   :  { %v7959_v52 = vpop.f32.mrb[24].mxu0  ;;  %v6532_v53 = vpop.f32.mrb[41].mxu1  ;;  %v3585_v54 = vsel %vm3557_vm3, %v7957_v50, -inf }
 0x2ac   :  { %v6527_v56 = vpop.f32.mrb[25].mxu0  ;;  %3586 = vmax.xlane.f32.xlu1 %v3585_v54  ;;  %v3582_v59 = vsel %vm3557_vm3, %v7959_v52, -inf  ;;  %7139 = vpow2.f32 %v3622_v51 }
 0x2ad   :  { %3583 = vmax.xlane.f32.xlu0 %v3582_v59 }
 0x2b6   :  { %v7965_v58 = vpop.f32.mrb[42].mxu1  ;;  %v7973_v7 = vpop.eup %7139 }
 0x2b7   :  { %v7967_v60 = vpop.f32.mrb[26].mxu0  ;;  %v6542_v61 = vpop.f32.mrb[43].mxu1  ;;  %v3591_v1 = vsel %vm3557_vm3, %v7965_v58, -inf  ;;  %v3654_v15 = vsel %vm3557_vm3, %v7973_v7, 0.0 }
 0x2b8   :  { %v6537_v2 = vpop.f32.mrb[27].mxu0  ;;  %3592 = vmax.xlane.f32.xlu1 %v3591_v1  ;;  %v3588_v6 = vsel %vm3557_vm3, %v7967_v60, -inf }
 0x2b9   :  { %3589 = vmax.xlane.f32.xlu0 %v3588_v6 }
 0x2ba   :  { %v7975_v10 = vpop.f32.mrb[44].mxu1 }
 0x2bb   :  { %v7977_v11 = vpop.f32.mrb[28].mxu0  ;;  %v6552_v13 = vpop.f32.mrb[45].mxu1  ;;  %v3597_v36 = vsel %vm3557_vm3, %v7975_v10, -inf }
 0x2bc   :  { %v6547_v14 = vpop.f32.mrb[29].mxu0  ;;  %v3594_v16 = vsel %vm3557_vm3, %v7977_v11, -inf }
 0x2bd   :  { %3655 = vadd.xlane.f32.xlu0 %v3654_v15 }
 0x2c1   :  { %3595 = vmax.xlane.f32.xlu0 %v3594_v16 }
 0x2c2   :  { %v3563_v17 = vpop.xlane.xlu0 %3562 }
 0x2c3   :  { %v3607_v18 = vsub.f32 %v2489_v19, %v3563_v17 }
 0x2c5   :  { %v3624_v24 = vmul.f32 1.442695, %v3607_v18 }
 0x2c6   :  { %v7983_v25 = vpop.f32.mrb[46].mxu1 }
 0x2c7   :  { %7141 = vpow2.f32 %v3624_v24  ;;  %v7985_v27 = vpop.f32.mrb[30].mxu0  ;;  %v6562_v32 = vpop.f32.mrb[47].mxu1  ;;  %v3603_v16 = vsel %vm3557_vm3, %v7983_v25, -inf }
 0x2c8   :  { %v6557_v33 = vpop.f32.mrb[31].mxu0  ;;  %v3600_v6 = vsel %vm3557_vm3, %v7985_v27, -inf }
 0x2d1   :  { %v7987_v55 = vpop.eup %7141 }
 0x2d2   :  { %v3657_v35 = vsel %vm3557_vm3, %v7987_v55, 0.0 }
 0x2d3   :  { %3658 = vadd.xlane.f32.xlu1 %v3657_v35 }
 0x2d7   :  { %3598 = vmax.xlane.f32.xlu1 %v3597_v36 }
 0x326   :  { %v3566_v40 = vpop.xlane.xlu1 %3565 }
 0x327   :  { %v3608_v19 = vsub.f32 %v7935_v34, %v3566_v40 }
 0x329   :  { %v3626_v41 = vmul.f32 1.442695, %v3608_v19 }
 0x32a   :  { %v3572_v4 = vpop.xlane.xlu0 %3571  ;;  %v3569_v22 = vpop.xlane.xlu1 %3568 }
 0x32b   :  { %7143 = vpow2.f32 %v3626_v41  ;;  %v3610_v44 = vsub.f32 %v7941_v39, %v3572_v4  ;;  %v3609_v42 = vsub.f32 %v7933_v37, %v3569_v22 }
 0x32d   :  { %v3630_v43 = vmul.f32 1.442695, %v3610_v44  ;;  %v3628_v28 = vmul.f32 1.442695, %v3609_v42 }
 0x32e   :  { %v3575_v47 = vpop.xlane.xlu1 %3574 }
 0x32f   :  { %v3611_v48 = vsub.f32 %v7939_v38, %v3575_v47  ;;  %7145 = vpow2.f32 %v3628_v28 }
 0x330   :  { %7147 = vpow2.f32 %v3630_v43 }
 0x331   :  { %v3632_v49 = vmul.f32 1.442695, %v3611_v48 }
 0x333   :  { %7149 = vpow2.f32 %v3632_v49 }
 0x335   :  { %v7997_v51 = vpop.eup %7143  ;;  %v3581_v53 = vpop.xlane.xlu1 %3580 }
 0x336   :  { %v3613_v34 = vsub.f32 %v7949_v45, %v3581_v53  ;;  %v3578_v54 = vpop.xlane.xlu0 %3577  ;;  %v3660_v39 = vsel %vm3557_vm3, %v7997_v51, 0.0 }
 0x337   :  { %v3612_v37 = vsub.f32 %v7951_v46, %v3578_v54  ;;  %3661 = vadd.xlane.f32.xlu0 %v3660_v39 }
 0x338   :  { %v3636_v56 = vmul.f32 1.442695, %v3613_v34 }
 0x339   :  { %v3634_v59 = vmul.f32 1.442695, %v3612_v37  ;;  %v3587_v61 = vpop.xlane.xlu1 %3586  ;;  %v8003_v38 = vpop.eup %7145 }
 0x33a   :  { %7151 = vpow2.f32 %v3636_v56  ;;  %v3615_v1 = vsub.f32 %v7957_v50, %v3587_v61  ;;  %v3584_v2 = vpop.xlane.xlu0 %3583  ;;  %v8008_v45 = vpop.eup %7147  ;;  %v3663_v46 = vsel %vm3557_vm3, %v8003_v38, 0.0 }
 0x33b   :  { %7153 = vpow2.f32 %v3634_v59  ;;  %v3614_v13 = vsub.f32 %v7959_v52, %v3584_v2  ;;  %3601 = vmax.xlane.f32.xlu0 %v3600_v6  ;;  %3664 = vadd.xlane.f32.xlu1 %v3663_v46  ;;  %v3666_v50 = vsel %vm3557_vm3, %v8008_v45, 0.0 }
 0x33c   :  { %v3640_v14 = vmul.f32 1.442695, %v3615_v1 }
 0x33d   :  { %v3638_v15 = vmul.f32 1.442695, %v3614_v13  ;;  %v8017_v17 = vpop.eup %7149 }
 0x33e   :  { %7155 = vpow2.f32 %v3640_v14  ;;  %v3669_v52 = vsel %vm3557_vm3, %v8017_v17, 0.0 }
 0x33f   :  { %7157 = vpow2.f32 %v3638_v15  ;;  %3667 = vadd.xlane.f32.xlu0 %v3666_v50  ;;  %3604 = vmax.xlane.f32.xlu1 %v3603_v16 }
 0x343   :  { %3670 = vadd.xlane.f32.xlu1 %v3669_v52 }
 0x344   :  { %v8021_v18 = vpop.eup %7151 }
 0x345   :  { %v8023_v24 = vpop.eup %7153  ;;  %v3593_v32 = vpop.xlane.xlu1 %3592  ;;  %v3675_v33 = vsel %vm3557_vm3, %v8021_v18, 0.0 }
 0x346   :  { %v3617_v35 = vsub.f32 %v7965_v58, %v3593_v32  ;;  %v3590_v36 = vpop.xlane.xlu0 %3589  ;;  %v3672_v40 = vsel %vm3557_vm3, %v8023_v24, 0.0 }
 0x347   :  { %v3616_v19 = vsub.f32 %v7967_v60, %v3590_v36  ;;  %3673 = vadd.xlane.f32.xlu0 %v3672_v40  ;;  %3676 = vadd.xlane.f32.xlu1 %v3675_v33 }
 0x348   :  { %v8031_v41 = vpop.eup %7155  ;;  %v3644_v4 = vmul.f32 1.442695, %v3617_v35 }
 0x349   :  { %v8033_v22 = vpop.eup %7157  ;;  %v3642_v44 = vmul.f32 1.442695, %v3616_v19  ;;  %v3681_v42 = vsel %vm3557_vm3, %v8031_v41, 0.0 }
 0x34a   :  { %7159 = vpow2.f32 %v3644_v4  ;;  %v3656_v43 = vpop.xlane.xlu0 %3655  ;;  %v3678_v58 = vsel %vm3557_vm3, %v8033_v22, 0.0 }
 0x34b   :  { %7161 = vpow2.f32 %v3642_v44  ;;  %3679 = vadd.xlane.f32.xlu0 %v3678_v58  ;;  %3682 = vadd.xlane.f32.xlu1 %v3681_v42 }
 0x34c   :  { %7163 = vrcp.f32 %v3656_v43 }
 0x34e   :  { %v3596_v60 = vpop.xlane.xlu0 %3595 }
 0x34f   :  { %v3618_v28 = vsub.f32 %v7977_v11, %v3596_v60 }
 0x351   :  { %v3646_v47 = vmul.f32 1.442695, %v3618_v28 }
 0x353   :  { %7165 = vpow2.f32 %v3646_v47 }
 0x354   :  { %v8040_v48 = vpop.eup %7159 }
 0x355   :  { %v8042_v49 = vpop.eup %7161  ;;  %v3687_v53 = vsel %vm3557_vm3, %v8040_v48, 0.0 }
 0x356   :  { %v7164_v34 = vpop.eup %7163  ;;  %3688 = vadd.xlane.f32.xlu1 %v3687_v53  ;;  %v3684_v54 = vsel %vm3557_vm3, %v8042_v49, 0.0 }
 0x357   :  { %v3718_v39 = vmul.f32 %v7164_v34, %v7973_v7  ;;  %3685 = vadd.xlane.f32.xlu0 %v3684_v54 }
 0x359   :  { %6566 = vmatmul.mubr.msk.f32.vlgmr.msra.gmra.mrb[32].mxu0 %vm3557_vm3, %v3718_v39 }
 0x35a   :  { %6574 = vmatpush3.msra.mxu0 %v7917_v20  ;;  %6575 = vmatprep.mubr.msk.f32.mxu0 %vm7351_vm2, %v7350_v57 }
 0x35b   :  { %6583 = vmatprep.subr.mxu0 %v7350_v57 }
 0x35d   :  { %v8054_v11 = vpop.eup %7165 }
 0x35e   :  { %v3690_v37 = vsel %vm3557_vm3, %v8054_v11, 0.0 }
 0x35f   :  { %3691 = vadd.xlane.f32.xlu0 %v3690_v37 }
 0x360   :  { %v3659_v56 = vpop.xlane.xlu1 %3658 }
 0x361   :  { %7167 = vrcp.f32 %v3659_v56 }
 0x364   :  { %v3599_v59 = vpop.xlane.xlu1 %3598 }
 0x365   :  { %v3619_v7 = vsub.f32 %v7975_v10, %v3599_v59 }
 0x367   :  { %v3648_v61 = vmul.f32 1.442695, %v3619_v7  ;;  %v4904_v7 = vld [vmem:[#allocation10 + $0x10] sm:$0xff] }
 0x369   :  { %7169 = vpow2.f32 %v3648_v61  ;;  %v4905_v61 = vld [vmem:[#allocation10 + $0x18] sm:$0xff] }
 0x36b   :  { %v7168_v1 = vpop.eup %7167 }
 0x36c   :  { %v3719_v20 = vmul.f32 %v7168_v1, %v7987_v55 }
 0x36e   :  { %6571 = vmatmul.mubr.msk.f32.vlgmr.msra.gmra.mrb[48].mxu1 %vm3557_vm3, %v3719_v20 }
 0x36f   :  { %6579 = vmatpush3.msra.mxu1 %v7915_v12  ;;  %6580 = vmatprep.mubr.msk.f32.mxu1 %vm7351_vm2, %v7350_v57 }
 0x370   :  { %6588 = vmatprep.subr.mxu1 %v7350_v57 }
 0x373   :  { %v8065_v2 = vpop.eup %7169 }
 0x374   :  { %v3693_v6 = vsel %vm3557_vm3, %v8065_v2, 0.0 }
 0x375   :  { %3694 = vadd.xlane.f32.xlu1 %v3693_v6  ;;  %v4906_v6 = vld [vmem:[#allocation10 + $0x20] sm:$0xff] }
 0x3c4   :  { %v3662_v10 = vpop.xlane.xlu0 %3661 }
 0x3c5   :  { %7171 = vrcp.f32 %v3662_v10  ;;  %v4907_v10 = vld [vmem:[#allocation10 + $0x28] sm:$0xff] }
 0x3c8   :  { %v3602_v13 = vpop.xlane.xlu0 %3601  ;;  %v3665_v46 = vpop.xlane.xlu1 %3664 }
 0x3c9   :  { %v3620_v55 = vsub.f32 %v7985_v27, %v3602_v13  ;;  %7173 = vrcp.f32 %v3665_v46  ;;  %v7031_v13 = vpack.c.bf16 %v4907_v10, %v4906_v6  ;;  %v4909_v46 = vld [vmem:[#allocation10 + $0x38] sm:$0xff]  ;;  %v4932_v6 = vld [vmem:[#allocation10 + $0xf0] sm:$0xff] }
 0x3ca   :  { %v4933_v10 = vld [vmem:[#allocation10 + $0xf8] sm:$0xff] }
 0x3cb   :  { %v3650_v14 = vmul.f32 1.442695, %v3620_v55  ;;  %v4908_v55 = vld [vmem:[#allocation10 + $0x30] sm:$0xff] }
 0x3cc   :  { %v3668_v12 = vpop.xlane.xlu0 %3667  ;;  %v3605_v15 = vpop.xlane.xlu1 %3604 }
 0x3cd   :  { %7175 = vpow2.f32 %v3650_v14  ;;  %v3621_v50 = vsub.f32 %v7983_v25, %v3605_v15  ;;  %v7037_v14 = vpack.c.bf16 %v4909_v46, %v4908_v55  ;;  %v4911_v15 = vld [vmem:[#allocation10 + $0x48] sm:$0xff] }
 0x3ce   :  { %7177 = vrcp.f32 %v3668_v12  ;;  %v4910_v12 = vld [vmem:[#allocation10 + $0x40] sm:$0xff] }
 0x3cf   :  { %v7172_v16 = vpop.eup %7171  ;;  %v3652_v32 = vmul.f32 1.442695, %v3621_v50  ;;  %v7043_v50 = vpack.c.bf16 %v4911_v15, %v4910_v12  ;;  %v5962_v15 = vld [vmem:[%s8258_s5] ss:$0 sm:$0xff] }
 0x3d0   :  { %v3720_v52 = vmul.f32 %v7172_v16, %v7997_v51  ;;  %v3671_v33 = vpop.xlane.xlu1 %3670 }
 0x3d1   :  { %7179 = vpow2.f32 %v3652_v32  ;;  %v4912_v32 = vld [vmem:[#allocation10 + $0x50] sm:$0xff] }
 0x3d2   :  { %6576 = vmatmul.mubr.msk.f32.vlgmr.msra.gmra.mrb[34].mxu0 %vm3557_vm3, %v3720_v52  ;;  %7181 = vrcp.f32 %v3671_v33  ;;  %v4913_v33 = vld [vmem:[#allocation10 + $0x58] sm:$0xff] }
 0x3d3   :  { %6584 = vmatpush3.msra.mxu0 %v7825_v63  ;;  %6585 = vmatprep.mubr.msk.f32.mxu0 %vm7351_vm2, %v7350_v57  ;;  %v7174_v27 = vpop.eup %7173 }
 0x3d4   :  { %v3674_v35 = vpop.xlane.xlu0 %3673  ;;  %6593 = vmatprep.subr.mxu0 %v7350_v57  ;;  %v3721_v25 = vmul.f32 %v7174_v27, %v8003_v38  ;;  %v3677_v36 = vpop.xlane.xlu1 %3676  ;;  %v7049_v27 = vpack.c.bf16 %v4913_v33, %v4912_v32 }
 0x3d5   :  { %7183 = vrcp.f32 %v3674_v35 }
 0x3d6   :  { %7185 = vrcp.f32 %v3677_v36  ;;  %6581 = vmatmul.mubr.msk.f32.vlgmr.msra.gmra.mrb[50].mxu1 %vm3557_vm3, %v3721_v25 }
 0x3d7   :  { %v8078_v51 = vpop.eup %7175  ;;  %6589 = vmatpush3.msra.mxu1 %v7823_v62  ;;  %6590 = vmatprep.mubr.msk.f32.mxu1 %vm7351_vm2, %v7350_v57 }
 0x3d8   :  { %v7178_v40 = vpop.eup %7177  ;;  %v3680_v63 = vpop.xlane.xlu0 %3679  ;;  %v3696_v19 = vsel %vm3557_vm3, %v8078_v51, 0.0  ;;  %6598 = vmatprep.subr.mxu1 %v7350_v57 }
 0x3d9   :  { %v3722_v4 = vmul.f32 %v7178_v40, %v8008_v45  ;;  %7187 = vrcp.f32 %v3680_v63  ;;  %v3683_v38 = vpop.xlane.xlu1 %3682  ;;  %3697 = vadd.xlane.f32.xlu0 %v3696_v19  ;;  %v4915_v40 = vld [vmem:[#allocation10 + $0x68] sm:$0xff] }
 0x3da   :  { %7189 = vrcp.f32 %v3683_v38 }
 0x3db   :  { %6586 = vmatmul.mubr.msk.f32.vlgmr.msra.gmra.mrb[36].mxu0 %vm3557_vm3, %v3722_v4  ;;  %v8089_v44 = vpop.eup %7179 }
 0x3dc   :  { %6594 = vmatpush3.msra.mxu0 %v7921_v23  ;;  %6595 = vmatprep.mubr.msk.f32.mxu0 %vm7351_vm2, %v7350_v57  ;;  %v7182_v62 = vpop.eup %7181  ;;  %v3699_v42 = vsel %vm3557_vm3, %v8089_v44, 0.0 }
 0x3dd   :  { %6603 = vmatprep.subr.mxu0 %v7350_v57  ;;  %v3723_v45 = vmul.f32 %v7182_v62, %v8017_v17  ;;  %3700 = vadd.xlane.f32.xlu1 %v3699_v42  ;;  %v4916_v42 = vld [vmem:[#allocation10 + $0x70] sm:$0xff] }
 0x3df   :  { %v7184_v43 = vpop.eup %7183  ;;  %6591 = vmatmul.mubr.msk.f32.vlgmr.msra.gmra.mrb[52].mxu1 %vm3557_vm3, %v3723_v45  ;;  %v4917_v45 = vld [vmem:[#allocation10 + $0x78] sm:$0xff] }
 0x3e0   :  { %v7186_v58 = vpop.eup %7185  ;;  %v3724_v60 = vmul.f32 %v7184_v43, %v8023_v24  ;;  %6599 = vmatpush3.msra.mxu1 %v7919_v21  ;;  %6600 = vmatprep.mubr.msk.f32.mxu1 %vm7351_vm2, %v7350_v57 }
 0x3e1   :  { %v3725_v23 = vmul.f32 %v7186_v58, %v8021_v18  ;;  %6608 = vmatprep.subr.mxu1 %v7350_v57 }
 0x3e2   :  { %6596 = vmatmul.mubr.msk.f32.vlgmr.msra.gmra.mrb[38].mxu0 %vm3557_vm3, %v3724_v60 }
 0x3e3   :  { %v7188_v28 = vpop.eup %7187  ;;  %6604 = vmatpush3.msra.mxu0 %v7829_v5  ;;  %v3689_v17 = vpop.xlane.xlu1 %3688  ;;  %6605 = vmatprep.mubr.msk.f32.mxu0 %vm7351_vm2, %v7350_v57 }
 0x3e4   :  { %v7190_v24 = vpop.eup %7189  ;;  %v3726_v47 = vmul.f32 %v7188_v28, %v8033_v22  ;;  %6601 = vmatmul.mubr.msk.f32.vlgmr.msra.gmra.mrb[54].mxu1 %vm3557_vm3, %v3725_v23  ;;  %7191 = vrcp.f32 %v3689_v17  ;;  %v3686_v21 = vpop.xlane.xlu0 %3685  ;;  %6613 = vmatprep.subr.mxu0 %v7350_v57  ;;  %v7061_v23 = vpack.c.bf16 %v4917_v45, %v4916_v42 }
 0x3e5   :  { %v3727_v18 = vmul.f32 %v7190_v24, %v8031_v41  ;;  %6609 = vmatpush3.msra.mxu1 %v7827_v3  ;;  %7193 = vrcp.f32 %v3686_v21  ;;  %6610 = vmatprep.mubr.msk.f32.mxu1 %vm7351_vm2, %v7350_v57  ;;  %v4919_v21 = vld [vmem:[#allocation10 + $0x88] sm:$0xff] }
 0x3e6   :  { %6618 = vmatprep.subr.mxu1 %v7350_v57  ;;  %6606 = vmatmul.mubr.msk.f32.vlgmr.msra.gmra.mrb[40].mxu0 %vm3557_vm3, %v3726_v47  ;;  %v4918_v47 = vld [vmem:[#allocation10 + $0x80] sm:$0xff] }
 0x3e7   :  { %6614 = vmatpush3.msra.mxu0 %v7926_v30  ;;  %6615 = vmatprep.mubr.msk.f32.mxu0 %vm7351_vm2, %v7350_v57 }
 0x3e8   :  { %6611 = vmatmul.mubr.msk.f32.vlgmr.msra.gmra.mrb[56].mxu1 %vm3557_vm3, %v3727_v18  ;;  %6623 = vmatprep.subr.mxu0 %v7350_v57  ;;  %v7067_v18 = vpack.c.bf16 %v4919_v21, %v4918_v47 }
 0x3e9   :  { %6619 = vmatpush3.msra.mxu1 %v7924_v29  ;;  %6620 = vmatprep.mubr.msk.f32.mxu1 %vm7351_vm2, %v7350_v57  ;;  %v4902_v29 = vld [vmem:[#allocation10] sm:$0xff] }
 0x3ea   :  { %6628 = vmatprep.subr.mxu1 %v7350_v57 }
 0x3ec   :  { %v3692_v3 = vpop.xlane.xlu0 %3691 }
 0x3ed   :  { %7195 = vrcp.f32 %v3692_v3 }
 0x3ee   :  { %v7192_v5 = vpop.eup %7191 }
 0x3ef   :  { %v7194_v41 = vpop.eup %7193  ;;  %v3729_v30 = vmul.f32 %v7192_v5, %v8040_v48  ;;  %v4903_v48 = vld [vmem:[#allocation10 + $0x8] sm:$0xff] }
 0x3f0   :  { %v3728_v22 = vmul.f32 %v7194_v41, %v8042_v49 }
 0x3f1   :  { %6621 = vmatmul.mubr.msk.f32.vlgmr.msra.gmra.mrb[58].mxu1 %vm3557_vm3, %v3729_v30 }
 0x3f2   :  { %6629 = vmatpush3.msra.mxu1 %v7835_v8  ;;  %6616 = vmatmul.mubr.msk.f32.vlgmr.msra.gmra.mrb[42].mxu0 %vm3557_vm3, %v3728_v22  ;;  %v7019_v8 = vpack.c.bf16 %v4903_v48, %v4902_v29  ;;  %v4920_v22 = vld [vmem:[#allocation10 + $0x90] sm:$0xff]  ;;  %v4921_v29 = vld [vmem:[#allocation10 + $0x98] sm:$0xff] }
 0x3f3   :  { %6624 = vmatpush3.msra.mxu0 %v7837_v9  ;;  %6625 = vmatprep.mubr.msk.f32.mxu0 %vm7351_vm2, %v7350_v57  ;;  %v7073_v48 = vpack.c.bf16 %v4921_v29, %v4920_v22 }
 0x3f4   :  { %6633 = vmatprep.subr.mxu0 %v7350_v57  ;;  %6630 = vmatprep.mubr.msk.f32.mxu1 %vm7351_vm2, %v7350_v57 }
 0x3f5   :  { %6638 = vmatprep.subr.mxu1 %v7350_v57 }
 0x3f7   :  { %v7196_v49 = vpop.eup %7195 }
 0x3f8   :  { %v3730_v53 = vmul.f32 %v7196_v49, %v8054_v11 }
 0x3fa   :  { %6626 = vmatmul.mubr.msk.f32.vlgmr.msra.gmra.mrb[44].mxu0 %vm3557_vm3, %v3730_v53 }
 0x3fb   :  { %6634 = vmatpush3.msra.mxu0 %v7930_v26  ;;  %6635 = vmatprep.mubr.msk.f32.mxu0 %vm7351_vm2, %v7350_v57 }
 0x3fc   :  { %7021 = vmatprep.subr.msk.bf16.mxu0 %vm7479_vm1, %v7019_v8 }
 0x402   :  { %v3695_v9 = vpop.xlane.xlu1 %3694 }
 0x403   :  { %7197 = vrcp.f32 %v3695_v9  ;;  %v4923_v9 = vld [vmem:[#allocation10 + $0xa8] sm:$0xff] }
 0x40d   :  { %v7198_v34 = vpop.eup %7197 }
 0x40e   :  { %v3731_v54 = vmul.f32 %v7198_v34, %v8065_v2  ;;  %v7025_v2 = vpack.c.bf16 %v4905_v61, %v4904_v7  ;;  %v4928_v61 = vld [vmem:[#allocation10 + $0xd0] sm:$0xff] }
 0x410   :  { %6631 = vmatmul.mubr.msk.f32.vlgmr.msra.gmra.mrb[60].mxu1 %vm3557_vm3, %v3731_v54  ;;  %v4924_v54 = vld [vmem:[#allocation10 + $0xb0] sm:$0xff] }
 0x411   :  { %6639 = vmatpush3.msra.mxu1 %v7928_v31  ;;  %6640 = vmatprep.mubr.msk.f32.mxu1 %vm7351_vm2, %v7350_v57 }
 0x42c   :  { %v3803_v39 = vpop.f32.mrb[32].mxu0 }
 0x42d   :  { %v6567_v26 = vpop.f32.mrb[33].mxu0 }
 0x441   :  { %v3876_v11 = vpop.f32.mrb[48].mxu1 }
 0x442   :  { %v6572_v37 = vpop.f32.mrb[49].mxu1 }
 0x443   :  { %v4927_v37 = vld [vmem:[#allocation10 + $0xc8] sm:$0xff] }
 0x466   :  { %v3698_v56 = vpop.xlane.xlu0 %3697 }
 0x467   :  { %7199 = vrcp.f32 %v3698_v56 }
 0x46a   :  { %v3701_v59 = vpop.xlane.xlu1 %3700 }
 0x46b   :  { %7201 = vrcp.f32 %v3701_v59 }
 0x471   :  { %v7200_v1 = vpop.eup %7199 }
 0x472   :  { %v3732_v20 = vmul.f32 %v7200_v1, %v8078_v51  ;;  %v4914_v51 = vld [vmem:[#allocation10 + $0x60] sm:$0xff]  ;;  %v4929_v1 = vld [vmem:[#allocation10 + $0xd8] sm:$0xff] }
 0x473   :  { %v7055_v19 = vpack.c.bf16 %v4915_v40, %v4914_v51 }
 0x474   :  { %6636 = vmatmul.mubr.msk.f32.vlgmr.msra.gmra.mrb[46].mxu0 %vm3557_vm3, %v3732_v20  ;;  %v7097_v20 = vpack.c.bf16 %v4929_v1, %v4928_v61 }
 0x475   :  { %7024 = vmatpush3.bf16.xpose.msk.msra.mxu0 %vm7479_vm1, %v7019_v8  ;;  %6651 = vmatprep.mubr.msk.f32.mxu0 %vm140_vm0, %v3803_v39  ;;  %v7202_v57 = vpop.eup %7201  ;;  %v4922_v8 = vld [vmem:[#allocation10 + $0xa0] sm:$0xff]  ;;  %v4925_v39 = vld [vmem:[#allocation10 + $0xb8] sm:$0xff] }
 0x476   :  { %7027 = vmatprep.subr.msk.bf16.mxu0 %vm7479_vm1, %v7025_v2  ;;  %v3733_v31 = vmul.f32 %v7202_v57, %v8089_v44  ;;  %v7079_v34 = vpack.c.bf16 %v4923_v9, %v4922_v8  ;;  %v7085_v26 = vpack.c.bf16 %v4925_v39, %v4924_v54  ;;  %v4931_v57 = vld [vmem:[#allocation10 + $0xe8] sm:$0xff] }
 0x478   :  { %6641 = vmatmul.mubr.msk.f32.vlgmr.msra.gmra.mrb[62].mxu1 %vm3557_vm3, %v3733_v31 }
 0x47d   :  { %7030 = vmatpush3.bf16.xpose.msk.msra.mxu0 %vm7479_vm1, %v7025_v2  ;;  %v4930_v2 = vld [vmem:[#allocation10 + $0xe0] sm:$0xff] }
 0x47e   :  { %7033 = vmatprep.subr.msk.bf16.mxu0 %vm7479_vm1, %v7031_v13  ;;  %v7103_v31 = vpack.c.bf16 %v4931_v57, %v4930_v2 }
 0x484   :  { %6652 = vmatmul.mubr.msk.f32.vlgmr.msra.gmra.mrb[48].mxu0 %vm140_vm0, %v3876_v11  ;;  %v4926_v11 = vld [vmem:[#allocation10 + $0xc0] sm:$0xff] }
 0x485   :  { %7036 = vmatpush3.bf16.xpose.msk.msra.mxu0 %vm7479_vm1, %v7031_v13  ;;  %v7091_v56 = vpack.c.bf16 %v4927_v37, %v4926_v11  ;;  %v7109_v13 = vpack.c.bf16 %v4933_v10, %v4932_v6 }
 0x486   :  { %7039 = vmatprep.subr.msk.bf16.mxu0 %vm7479_vm1, %v7037_v14 }
 0x48d   :  { %7042 = vmatpush3.bf16.xpose.msk.msra.mxu0 %vm7479_vm1, %v7037_v14 }
 0x48e   :  { %7045 = vmatprep.subr.msk.bf16.mxu0 %vm7479_vm1, %v7043_v50 }
 0x4a5   :  { %v3949_v16 = vpop.f32.mrb[34].mxu0 }
 0x4a6   :  { %v6577_v52 = vpop.f32.mrb[35].mxu0  ;;  %6662 = vmatprep.mubr.msk.f32.mxu0 %vm140_vm0, %v3949_v16 }
 0x4a9   :  { %v4022_v35 = vpop.f32.mrb[50].mxu1 }
 0x4aa   :  { %v6582_v25 = vpop.f32.mrb[51].mxu1  ;;  %6663 = vmatmul.mubr.msk.f32.vlgmr.msra.gmra.mrb[48].mxu0 %vm140_vm0, %v4022_v35 }
 0x4ab   :  { %7048 = vmatpush3.bf16.xpose.msk.msra.mxu0 %vm7479_vm1, %v7043_v50 }
 0x4ac   :  { %7051 = vmatprep.subr.msk.bf16.mxu0 %vm7479_vm1, %v7049_v27 }
 0x4ae   :  { %v4095_v36 = vpop.f32.mrb[36].mxu0 }
 0x4af   :  { %v6587_v63 = vpop.f32.mrb[37].mxu0  ;;  %6673 = vmatprep.mubr.msk.f32.mxu0 %vm140_vm0, %v4095_v36 }
 0x4b2   :  { %v4168_v4 = vpop.f32.mrb[52].mxu1 }
 0x4b3   :  { %v6592_v38 = vpop.f32.mrb[53].mxu1  ;;  %7054 = vmatpush3.bf16.xpose.msk.msra.mxu0 %vm7479_vm1, %v7049_v27 }
 0x4b4   :  { %7057 = vmatprep.subr.msk.bf16.mxu0 %vm7479_vm1, %v7055_v19 }
 0x4b5   :  { %v4241_v44 = vpop.f32.mrb[38].mxu0 }
 0x4b6   :  { %v6597_v62 = vpop.f32.mrb[39].mxu0 }
 0x4b7   :  { %v4314_v43 = vpop.f32.mrb[54].mxu1 }
 0x4b8   :  { %v6602_v58 = vpop.f32.mrb[55].mxu1 }
 0x4b9   :  { %v4387_v60 = vpop.f32.mrb[40].mxu0 }
 0x4ba   :  { %v6607_v28 = vpop.f32.mrb[41].mxu0  ;;  %6674 = vmatmul.mubr.msk.f32.vlgmr.msra.gmra.mrb[48].mxu0 %vm140_vm0, %v4168_v4 }
 0x4bb   :  { %v4460_v17 = vpop.f32.mrb[56].mxu1  ;;  %7060 = vmatpush3.bf16.xpose.msk.msra.mxu0 %vm7479_vm1, %v7055_v19  ;;  %6684 = vmatprep.mubr.msk.f32.mxu0 %vm140_vm0, %v4241_v44 }
 0x4bc   :  { %v6612_v24 = vpop.f32.mrb[57].mxu1  ;;  %7063 = vmatprep.subr.msk.bf16.mxu0 %vm7479_vm1, %v7061_v23 }
 0x4c3   :  { %7066 = vmatpush3.bf16.xpose.msk.msra.mxu0 %vm7479_vm1, %v7061_v23 }
 0x4c4   :  { %v4606_v3 = vpop.f32.mrb[58].mxu1  ;;  %7069 = vmatprep.subr.msk.bf16.mxu0 %vm7479_vm1, %v7067_v18 }
 0x4c5   :  { %v4533_v5 = vpop.f32.mrb[42].mxu0  ;;  %v6622_v41 = vpop.f32.mrb[59].mxu1 }
 0x4c6   :  { %v6617_v30 = vpop.f32.mrb[43].mxu0 }
 0x4ca   :  { %6685 = vmatmul.mubr.msk.f32.vlgmr.msra.gmra.mrb[48].mxu0 %vm140_vm0, %v4314_v43 }
 0x4cb   :  { %7072 = vmatpush3.bf16.xpose.msk.msra.mxu0 %vm7479_vm1, %v7067_v18  ;;  %6695 = vmatprep.mubr.msk.f32.mxu0 %vm140_vm0, %v4387_v60 }
 0x4cc   :  { %7075 = vmatprep.subr.msk.bf16.mxu0 %vm7479_vm1, %v7073_v48 }
 0x4cd   :  { %v4679_v49 = vpop.f32.mrb[44].mxu0 }
 0x4ce   :  { %v6627_v53 = vpop.f32.mrb[45].mxu0 }
 0x4d3   :  { %7078 = vmatpush3.bf16.xpose.msk.msra.mxu0 %vm7479_vm1, %v7073_v48 }
 0x4d4   :  { %7081 = vmatprep.subr.msk.bf16.mxu0 %vm7479_vm1, %v7079_v34 }
 0x4da   :  { %6696 = vmatmul.mubr.msk.f32.vlgmr.msra.gmra.mrb[48].mxu0 %vm140_vm0, %v4460_v17 }
 0x4db   :  { %7084 = vmatpush3.bf16.xpose.msk.msra.mxu0 %vm7479_vm1, %v7079_v34  ;;  %6706 = vmatprep.mubr.msk.f32.mxu0 %vm140_vm0, %v4533_v5 }
 0x4dc   :  { %7087 = vmatprep.subr.msk.bf16.mxu0 %vm7479_vm1, %v7085_v26 }
 0x4e3   :  { %v4752_v59 = vpop.f32.mrb[60].mxu1  ;;  %7090 = vmatpush3.bf16.xpose.msk.msra.mxu0 %vm7479_vm1, %v7085_v26 }
 0x4e4   :  { %v6632_v7 = vpop.f32.mrb[61].mxu1  ;;  %7093 = vmatprep.subr.msk.bf16.mxu0 %vm7479_vm1, %v7091_v56 }
 0x4ea   :  { %6707 = vmatmul.mubr.msk.f32.vlgmr.msra.gmra.mrb[48].mxu0 %vm140_vm0, %v4606_v3 }
 0x4eb   :  { %7096 = vmatpush3.bf16.xpose.msk.msra.mxu0 %vm7479_vm1, %v7091_v56  ;;  %6717 = vmatprep.mubr.msk.f32.mxu0 %vm140_vm0, %v4679_v49 }
 0x4ec   :  { %7099 = vmatprep.subr.msk.bf16.mxu0 %vm7479_vm1, %v7097_v20 }
 0x4f3   :  { %7102 = vmatpush3.bf16.xpose.msk.msra.mxu0 %vm7479_vm1, %v7097_v20 }
 0x4f4   :  { %7105 = vmatprep.subr.msk.bf16.mxu0 %vm7479_vm1, %v7103_v31 }
 0x4fa   :  { %6718 = vmatmul.mubr.msk.f32.vlgmr.msra.gmra.mrb[48].mxu0 %vm140_vm0, %v4752_v59 }
 0x4fb   :  { %7108 = vmatpush3.bf16.xpose.msk.msra.mxu0 %vm7479_vm1, %v7103_v31 }
 0x4fc   :  { %7111 = vmatprep.subr.msk.bf16.mxu0 %vm7479_vm1, %v7109_v13 }
 0x503   :  { %7114 = vmatpush3.bf16.xpose.msk.msra.mxu0 %vm7479_vm1, %v7109_v13 }
 0x547   :  { %v4825_v55 = vpop.f32.mrb[46].mxu0 }
 0x548   :  { %v6637_v46 = vpop.f32.mrb[47].mxu0  ;;  %6728 = vmatprep.mubr.msk.f32.mxu0 %vm140_vm0, %v4825_v55 }
 0x54b   :  { %v4898_v14 = vpop.f32.mrb[62].mxu1 }
 0x54c   :  { %v6642_v12 = vpop.f32.mrb[63].mxu1  ;;  %6729 = vmatmul.mubr.msk.f32.vlgmr.msra.gmra.mrb[48].mxu0 %vm140_vm0, %v4898_v14 }
 0x61f   :  { %v6730_v50 = vpop.f32.mrb[48].mxu0 }
 0x620   :  { %v5700_v16 = vadd.f32 %v6730_v50, %v5962_v15  ;;  %v5669_v52 = vpop.f32.mrb[49].mxu0 }
 0x621   :  { %v5699_v32 = vadd.f32 %v5962_v15, %v5669_v52 }
 0x622   :  { %5702 = vst.msk [vmem:[#allocation11 + $0x8] sm:$0xff] %vm140_vm0, %v5700_v16 }
 0x623   :  { %5701 = vst.msk [vmem:[#allocation11] sm:$0xff] %vm140_vm0, %v5699_v32 }
 0x624   :  { %7324 = shalt.err (!%p7321_p2)
}
 0x625   :  { %s7325_s14 = scalar_lea.hbm %s8259_s6, 256 }
 0x626   :  { %p7326_p3 = scmp.ne.s32.totalorder %s8259_s6, %s7325_s14  ;;  %p7329_p4 = scmp.lt.u32.totalorder %s7325_s14, %s8259_s6 }
 0x628   :  { %p7331_p5 = pnand %p7329_p4, %p7326_p3 }
 0x62a   :  { %7334 = shalt.err (!%p7331_p5)
}
 0x62b   :  { %5714 = dma.vmem_to_hbm [thread:$0]  %s5709_s24, 256, %s8259_s6, [#allocation4], %s7345_s9, %s7345_s9, %s7346_s10  }
 0x62c   :  { %7341 = dma.done.wait [#allocation4], 256  }
 0x62d   :  { %7342 = vsyncadd [#allocation4], 4294967040 }
 0x62e   :  { %5718 = vsyncpa [#allocation3], 1 }
 0x62f   :  { %5719 = vsyncpa [#allocation6], 1 }
 0x630   :  { %5720 = vsyncpa [#allocation9], 1 }
 0x631   :  { %5721 = vsyncpa [#allocation4], 1 }

</bundles_post_ra>
